<compile_context>
chip_gen: v5e
topology: v5e:2x2
jax: 0.10.0
libtpu: 0.0.40
codegen_flags: <defaults>
</compile_context>

<pallas_src>
import functools

import jax
import jax.numpy as jnp
from jax.experimental import pallas as pl
from jax.experimental.pallas import tpu as pltpu

WIDTH = 4  # module default


# ----------------------------- Pallas kernel -------------------------------
def meem_kernel(x_ref, win_ref, bin_ref, wmid_ref, bmid_ref,
                wee_ref, bee_ref, wout_ref, bout_ref, o_ref,
                *, img_w, img_hw, width):
    hid = win_ref.shape[0]
    Lb = x_ref.shape[1]                      # lanes in this block (whole images)
    x = x_ref[...]                           # (C, Lb), compute dtype
    cdt = x.dtype

    # ---- 3x3 avg-pool boundary masks: built once per grid step, keyed on the
    # ---- pixel index *within its own image*, pre-broadcast to (hid, Lb).
    lane = jax.lax.broadcasted_iota(jnp.int32, (1, Lb), 1)
    p = lane % img_hw                        # pixel index inside its image
    wpos = p % img_w

    def bmask(cond):
        return jnp.broadcast_to(cond, (hid, Lb)).astype(cdt)

    m_wf = bmask(wpos > 0)                   # has a (h, w-1) neighbour
    m_wl = bmask(wpos < img_w - 1)           # has a (h, w+1) neighbour
    m_hf = bmask(p >= img_w)                 # has a (h-1, w) neighbour
    m_hl = bmask(p < img_hw - img_w)         # has a (h+1, w) neighbour

    def boxsum3(f):
        # 3x3 box SUM of AvgPool2d(3, s=1, p=1, count_include_pad=True); the
        # /9 is folded into the consumer.  Separable: XLU lane rolls + masked
        # VPU adds; masks kill any wrap across row / image / pad boundaries.
        left = pltpu.roll(f, 1, 1)               # value from (h, w-1)
        right = pltpu.roll(f, Lb - 1, 1)         # value from (h, w+1)
        rs = f + m_wf * left + m_wl * right
        up = pltpu.roll(rs, img_w, 1)            # value from (h-1, w)
        down = pltpu.roll(rs, Lb - img_w, 1)     # value from (h+1, w)
        return rs + m_hf * up + m_hl * down

    def mm(w, f):
        # (Cout, Cin) @ (Cin, Lb).  Tiny Cin -> unrolled VPU broadcast-MAC
        # (an MXU dot would be <1% utilised); larger Cin -> bf16 MXU matmul
        # with f32 accumulate.
        cin = w.shape[1]
        if cin >= 32:
            return jnp.dot(w.astype(jnp.bfloat16), f.astype(jnp.bfloat16),
                           preferred_element_type=jnp.float32)
        acc = w[:, 0:1] * f[0:1, :]
        for c in range(1, cin):
            acc = acc + w[:, c:c + 1] * f[c:c + 1, :]
        return acc

    def sig(v):
        # sigmoid via a single EUP tanh push (vs exp + divide).
        return 0.5 * jnp.tanh(0.5 * v) + 0.5

    # in_conv: 1x1 conv (BN folded) -> sigmoid
    mid = sig(mm(win_ref[...], x) + bin_ref[...])            # (hid, Lb)

    # out_conv accumulated branch by branch in f32 (wout/bout stay f32),
    # seeded with branch 0 + bias (no zeros materialisation).
    acc = mm(wout_ref[0], mid) + bout_ref[...]               # (C, Lb) f32

    # TODO(synk): if WIDTH is ever raised, switch to lax.fori_loop with dynamic
    # indexing into wmid/wee/wout to bound vreg live ranges.
    for i in range(width - 1):                               # statically unrolled
        # pool -> mid_conv: the 1/9 is pre-folded into wmid, so feed the box sum.
        mid = sig(mm(wmid_ref[i], boxsum3(mid)) + bmid_ref[i])
        # EdgeEnhancer: mid + sigmoid(BN(conv1x1(mid - avgpool(mid))))
        edge = sig(mm(wee_ref[i], mid - boxsum3(mid) * (1.0 / 9.0)) + bee_ref[i])
        acc = acc + mm(wout_ref[i + 1], mid + edge)

    o_ref[...] = jnp.maximum(acc, 0.0).astype(o_ref.dtype)   # ReLU, lane-dense


# ------------------------------- wrapper ------------------------------------
def meem_forward(x_nchw, params, *, compute_dtype=jnp.float32,
                 vmem_budget_bytes=24 * 2 ** 20):
    """x_nchw: (B, C, H, W) float32. Returns (B, C, H, W) float32.

    compute_dtype=jnp.bfloat16 runs the branch math (MACs / pools / sigmoids)
    in bf16 (recommended on v6e/v7x); the out_conv accumulation stays f32.
    """
    win, bin_, wmid, bmid, wee, bee, wout, bout = params
    B, C, H, W = x_nchw.shape
    HW = H * W
    hid = win.shape[0]
    cdt = compute_dtype

    # Channel-major over the whole batch: (C, B*HW).  One XLA transpose outside
    # the kernel buys a single-grid-step kernel with long lane-dense vectors.
    x = jnp.transpose(x_nchw.reshape(B, C, HW), (1, 0, 2)).reshape(C, B * HW)
    L = B * HW

    # Fold the avg-pool 1/9 into the mid_conv weights (only the edge path
    # consumes the pooled tensor raw).
    wmid9 = wmid * (1.0 / 9.0)

    # Branch-math operands in compute dtype; out_conv weights/bias stay f32.
    x = x.astype(cdt)
    win, bin_ = win.astype(cdt), bin_.astype(cdt)
    wmid9, bmid = wmid9.astype(cdt), bmid.astype(cdt)
    wee, bee = wee.astype(cdt), bee.astype(cdt)
    wout, bout = wout.astype(jnp.float32), bout.astype(jnp.float32)

    # Lane blocking: whole images per block (so the 3x3 pool never crosses a
    # block and no halo is needed), sized to stay well inside scoped VMEM
    # (v7x default 32 MiB).  >1 block also spreads work over both v7x TCs.
    if HW % 128 == 0:
        est_bytes_per_image = HW * (8 * C + 10 * max(C, hid)) * 4   # rough
        cap = max(1, vmem_budget_bytes // max(est_bytes_per_image, 1))
        ipb = 1
        for d in range(1, B + 1):                 # largest divisor of B <= cap
            if B % d == 0 and d <= cap:
                ipb = d
        lanes, num_blocks, Lp = ipb * HW, B // ipb, L
        x_in = x
    else:
        # TODO(synk): halo-tiled spatial splitting for huge single images whose
        # padded (C, L) block would not fit VMEM; not needed at these shapes.
        Lp = ((L + 127) // 128) * 128             # lane-dense (unmasked) stores
        x_in = jnp.pad(x, ((0, 0), (0, Lp - L)))
        lanes, num_blocks = Lp, 1

    full = lambda a: pl.BlockSpec(a.shape, lambda i, n=a.ndim: (0,) * n)
    kernel = functools.partial(meem_kernel, img_w=W, img_hw=HW, width=WIDTH)

    out = pl.pallas_call(
        kernel,
        out_shape=jax.ShapeDtypeStruct((C, Lp), jnp.float32),
        grid=(num_blocks,),
        in_specs=[
            pl.BlockSpec((C, lanes), lambda i: (0, i)),
            full(win), full(bin_),
            full(wmid9), full(bmid),
            full(wee), full(bee),
            full(wout), full(bout),
        ],
        out_specs=pl.BlockSpec((C, lanes), lambda i: (0, i)),
        compiler_params=pltpu.CompilerParams(
            dimension_semantics=("parallel",)),
    )(x_in, win, bin_, wmid9, bmid, wee, bee, wout, bout)

    out = out[:, :L].reshape(C, B, HW)
    return jnp.transpose(out, (1, 0, 2)).reshape(B, C, H, W)


# ----------------------- deterministic parameter setup ----------------------
def fold_bn(w, gamma, beta, mean, var, eps=1e-5):
    """Fold BatchNorm (inference mode) into a bias-free 1x1 conv.
    w: (Cout, Cin). Returns folded weight (Cout, Cin) and bias (Cout, 1)."""
    scale = gamma / jnp.sqrt(var + eps)
    return w * scale[:, None], (beta - mean * scale)[:, None]


def make_params(key, in_dim, width=WIDTH):
    hid = in_dim // 2

    def bn_params(k, c):
        k1, k2, k3, k4 = jax.random.split(k, 4)
        gamma = 1.0 + 0.1 * jax.random.normal(k1, (c,))
        beta = 0.1 * jax.random.normal(k2, (c,))
        mean = 0.1 * jax.random.normal(k3, (c,))
        var = jnp.abs(jax.random.normal(k4, (c,))) + 0.5
        return gamma, beta, mean, var

    ki = iter(jax.random.split(key, 2 + 4 * (width - 1) + 2))

    w = 0.3 * jax.random.normal(next(ki), (hid, in_dim))       # (Cout, Cin)
    win, bin_ = fold_bn(w, *bn_params(next(ki), hid))

    wmid, bmid, wee, bee = [], [], [], []
    for _ in range(width - 1):
        w = 0.3 * jax.random.normal(next(ki), (hid, hid))
        wf, bf = fold_bn(w, *bn_params(next(ki), hid))
        wmid.append(wf); bmid.append(bf)
        w = 0.3 * jax.random.normal(next(ki), (hid, hid))
        wf, bf = fold_bn(w, *bn_params(next(ki), hid))
        wee.append(wf); bee.append(bf)
    wmid, bmid = jnp.stack(wmid), jnp.stack(bmid)              # (w-1,hid,hid), (w-1,hid,1)
    wee, bee = jnp.stack(wee), jnp.stack(bee)

    w = 0.3 * jax.random.normal(next(ki), (in_dim, hid * width))
    wout_full, bout = fold_bn(w, *bn_params(next(ki), in_dim)) # (C, w*hid), (C, 1)
    wout = jnp.stack([wout_full[:, j * hid:(j + 1) * hid]
                      for j in range(width)])                  # (width, C, hid) slabs

    params = (win, bin_, wmid, bmid, wee, bee, wout, bout)
    params = jax.tree.map(lambda a: a.astype(jnp.float32), params)
    return params, wout_full.astype(jnp.float32)


# --------------------------- pure-JAX reference ------------------------------
def ref_forward(x_nchw, params, wout_full, width=WIDTH):
    win, bin_, wmid, bmid, wee, bee, _, bout = params

    def conv(f, w, b):   # f: (B, Cin, H, W); w: (Cout, Cin); b: (Cout, 1)
        return jnp.einsum('oc,bchw->bohw', w, f) + b.reshape(1, -1, 1, 1)

    def pool(f):
        s = jax.lax.reduce_window(f, 0.0, jax.lax.add,
                                  (1, 1, 3, 3), (1, 1, 1, 1),
                                  [(0, 0), (0, 0), (1, 1), (1, 1)])
        return s / 9.0

    mid = jax.nn.sigmoid(conv(x_nchw, win, bin_))
    outs = [mid]
    for i in range(width - 1):
        mid = pool(mid)
        mid = jax.nn.sigmoid(conv(mid, wmid[i], bmid[i]))
        edge = jax.nn.sigmoid(conv(mid - pool(mid), wee[i], bee[i]))
        outs.append(mid + edge)
    cat = jnp.concatenate(outs, axis=1)
    return jnp.maximum(conv(cat, wout_full, bout), 0.0)


# ---------------------------------- main -------------------------------------
if __name__ == "__main__":
    B, C, H, W = 2, 8, 16, 16                                  # in_dim=8 -> hidden=4
    key = jax.random.PRNGKey(0)
    kx, kp = jax.random.split(key)
    x = jax.random.normal(kx, (B, C, H, W), jnp.float32)
    params, wout_full = make_params(kp, C)

    # f32 path (default; also the v5e configuration): strict check vs reference.
    out = jax.block_until_ready(meem_forward(x, params))
    ref = jax.block_until_ready(ref_forward(x, params, wout_full))
    assert out.shape == (B, C, H, W)
    err = float(jnp.max(jnp.abs(out - ref)))
    assert jnp.allclose(out, ref, atol=1e-4, rtol=1e-4), f"max abs diff {err}"

    # bf16 branch math (v6e/v7x recommendation): loose sanity check only.
    kind = jax.devices()[0].device_kind.lower()
    if not any(g in kind for g in ("v2", "v3", "v4", "v5")):
        out_bf16 = jax.block_until_ready(
            meem_forward(x, params, compute_dtype=jnp.bfloat16))
        assert bool(jnp.all(jnp.isfinite(out_bf16)))
        bferr = float(jnp.max(jnp.abs(out_bf16 - ref)))
        assert bferr < 0.25, f"bf16 max abs diff {bferr}"

    print("KERNEL_OK")
</pallas_src>

<mosaic_0001>
module attributes {stable_mosaic.version = 11 : i64} {
  func.func @meem_kernel(%arg0: i32, %arg1: memref<8x512xf32, #tpu.memory_space<vmem>>, %arg2: memref<4x8xf32, #tpu.memory_space<vmem>>, %arg3: memref<4x1xf32, #tpu.memory_space<vmem>>, %arg4: memref<3x4x4xf32, #tpu.memory_space<vmem>>, %arg5: memref<3x4x1xf32, #tpu.memory_space<vmem>>, %arg6: memref<3x4x4xf32, #tpu.memory_space<vmem>>, %arg7: memref<3x4x1xf32, #tpu.memory_space<vmem>>, %arg8: memref<4x8x4xf32, #tpu.memory_space<vmem>>, %arg9: memref<8x1xf32, #tpu.memory_space<vmem>>, %arg10: memref<8x512xf32, #tpu.memory_space<vmem>>) attributes {dimension_semantics = [#tpu.dimension_semantics<parallel>], iteration_bounds = array<i64: 1>, scalar_prefetch = 0 : i64, scratch_operands = 0 : i64, tpu.core_type = #tpu.core_type<tc>, window_params = [{transform_indices = @transform_0, window_bounds = array<i64: 8, 512>}, {pipeline_mode = #tpu.pipeline_mode<synchronous>, transform_indices = @transform_1, window_bounds = array<i64: 4, 8>}, {pipeline_mode = #tpu.pipeline_mode<synchronous>, transform_indices = @transform_2, window_bounds = array<i64: 4, 1>}, {pipeline_mode = #tpu.pipeline_mode<synchronous>, transform_indices = @transform_3, window_bounds = array<i64: 3, 4, 4>}, {pipeline_mode = #tpu.pipeline_mode<synchronous>, transform_indices = @transform_4, window_bounds = array<i64: 3, 4, 1>}, {pipeline_mode = #tpu.pipeline_mode<synchronous>, transform_indices = @transform_5, window_bounds = array<i64: 3, 4, 4>}, {pipeline_mode = #tpu.pipeline_mode<synchronous>, transform_indices = @transform_6, window_bounds = array<i64: 3, 4, 1>}, {pipeline_mode = #tpu.pipeline_mode<synchronous>, transform_indices = @transform_7, window_bounds = array<i64: 4, 8, 4>}, {pipeline_mode = #tpu.pipeline_mode<synchronous>, transform_indices = @transform_8, window_bounds = array<i64: 8, 1>}, {transform_indices = @transform_9, window_bounds = array<i64: 8, 512>}]} {
    %c0 = arith.constant 0 : index
    %c0_0 = arith.constant 0 : index
    %0 = vector.load %arg1[%c0, %c0_0] : memref<8x512xf32, #tpu.memory_space<vmem>>, vector<8x512xf32>
    %1 = tpu.iota {dimensions = array<i32: 1>} : vector<1x512xi32>
    %c256_i32 = arith.constant 256 : i32
    %c0_i32 = arith.constant 0 : i32
    %2 = arith.cmpi eq, %c256_i32, %c0_i32 : i32
    %c1_i32 = arith.constant 1 : i32
    %3 = arith.select %2, %c1_i32, %c256_i32 : i32
    %4 = vector.broadcast %3 : i32 to vector<1x512xi32>
    %5 = arith.remsi %1, %4 : vector<1x512xi32>
    %c0_i32_1 = arith.constant 0 : i32
    %6 = vector.broadcast %c0_i32_1 : i32 to vector<1x512xi32>
    %7 = arith.cmpi ne, %5, %6 : vector<1x512xi32>
    %c0_i32_2 = arith.constant 0 : i32
    %8 = vector.broadcast %c0_i32_2 : i32 to vector<1x512xi32>
    %9 = arith.cmpi slt, %5, %8 : vector<1x512xi32>
    %c0_i32_3 = arith.constant 0 : i32
    %10 = arith.cmpi slt, %3, %c0_i32_3 : i32
    %11 = vector.broadcast %10 : i1 to vector<1x512xi1>
    %12 = vector.broadcast %11 : vector<1x512xi1> to vector<1x512xi1>
    %13 = arith.xori %9, %12 : vector<1x512xi1>
    %14 = arith.andi %13, %7 : vector<1x512xi1>
    %15 = vector.broadcast %3 : i32 to vector<1x512xi32>
    %16 = arith.addi %5, %15 : vector<1x512xi32>
    %17 = arith.select %14, %16, %5 : vector<1x512xi1>, vector<1x512xi32>
    %c16_i32 = arith.constant 16 : i32
    %c0_i32_4 = arith.constant 0 : i32
    %18 = arith.cmpi eq, %c16_i32, %c0_i32_4 : i32
    %c1_i32_5 = arith.constant 1 : i32
    %19 = arith.select %18, %c1_i32_5, %c16_i32 : i32
    %20 = vector.broadcast %19 : i32 to vector<1x512xi32>
    %21 = arith.remsi %17, %20 : vector<1x512xi32>
    %c0_i32_6 = arith.constant 0 : i32
    %22 = vector.broadcast %c0_i32_6 : i32 to vector<1x512xi32>
    %23 = arith.cmpi ne, %21, %22 : vector<1x512xi32>
    %c0_i32_7 = arith.constant 0 : i32
    %24 = vector.broadcast %c0_i32_7 : i32 to vector<1x512xi32>
    %25 = arith.cmpi slt, %21, %24 : vector<1x512xi32>
    %c0_i32_8 = arith.constant 0 : i32
    %26 = arith.cmpi slt, %19, %c0_i32_8 : i32
    %27 = vector.broadcast %26 : i1 to vector<1x512xi1>
    %28 = vector.broadcast %27 : vector<1x512xi1> to vector<1x512xi1>
    %29 = arith.xori %25, %28 : vector<1x512xi1>
    %30 = arith.andi %29, %23 : vector<1x512xi1>
    %31 = vector.broadcast %19 : i32 to vector<1x512xi32>
    %32 = arith.addi %21, %31 : vector<1x512xi32>
    %33 = arith.select %30, %32, %21 : vector<1x512xi1>, vector<1x512xi32>
    %c0_i32_9 = arith.constant 0 : i32
    %34 = vector.broadcast %c0_i32_9 : i32 to vector<1x512xi32>
    %35 = arith.cmpi sgt, %33, %34 : vector<1x512xi32>
    %36 = vector.shape_cast %35 : vector<1x512xi1> to vector<1x512xi1>
    %37 = vector.broadcast %36 : vector<1x512xi1> to vector<4x512xi1>
    %38 = arith.extui %37 : vector<4x512xi1> to vector<4x512xi32>
    %39 = arith.sitofp %38 : vector<4x512xi32> to vector<4x512xf32>
    %c15_i32 = arith.constant 15 : i32
    %40 = vector.broadcast %c15_i32 : i32 to vector<1x512xi32>
    %41 = arith.cmpi slt, %33, %40 : vector<1x512xi32>
    %42 = vector.shape_cast %41 : vector<1x512xi1> to vector<1x512xi1>
    %43 = vector.broadcast %42 : vector<1x512xi1> to vector<4x512xi1>
    %44 = arith.extui %43 : vector<4x512xi1> to vector<4x512xi32>
    %45 = arith.sitofp %44 : vector<4x512xi32> to vector<4x512xf32>
    %c16_i32_10 = arith.constant 16 : i32
    %46 = vector.broadcast %c16_i32_10 : i32 to vector<1x512xi32>
    %47 = arith.cmpi sge, %17, %46 : vector<1x512xi32>
    %48 = vector.shape_cast %47 : vector<1x512xi1> to vector<1x512xi1>
    %49 = vector.broadcast %48 : vector<1x512xi1> to vector<4x512xi1>
    %50 = arith.extui %49 : vector<4x512xi1> to vector<4x512xi32>
    %51 = arith.sitofp %50 : vector<4x512xi32> to vector<4x512xf32>
    %c240_i32 = arith.constant 240 : i32
    %52 = vector.broadcast %c240_i32 : i32 to vector<1x512xi32>
    %53 = arith.cmpi slt, %17, %52 : vector<1x512xi32>
    %54 = vector.shape_cast %53 : vector<1x512xi1> to vector<1x512xi1>
    %55 = vector.broadcast %54 : vector<1x512xi1> to vector<4x512xi1>
    %56 = arith.extui %55 : vector<4x512xi1> to vector<4x512xi32>
    %57 = arith.sitofp %56 : vector<4x512xi32> to vector<4x512xf32>
    %c0_11 = arith.constant 0 : index
    %c0_12 = arith.constant 0 : index
    %58 = vector.load %arg2[%c0_11, %c0_12] : memref<4x8xf32, #tpu.memory_space<vmem>>, vector<4x8xf32>
    %59 = vector.extract_strided_slice %58 {offsets = [0, 0], sizes = [4, 1], strides = [1, 1]} : vector<4x8xf32> to vector<4x1xf32>
    %60 = vector.extract_strided_slice %0 {offsets = [0, 0], sizes = [1, 512], strides = [1, 1]} : vector<8x512xf32> to vector<1x512xf32>
    %61 = vector.broadcast %59 : vector<4x1xf32> to vector<4x512xf32>
    %62 = vector.broadcast %60 : vector<1x512xf32> to vector<4x512xf32>
    %63 = arith.mulf %61, %62 : vector<4x512xf32>
    %64 = vector.extract_strided_slice %58 {offsets = [0, 1], sizes = [4, 1], strides = [1, 1]} : vector<4x8xf32> to vector<4x1xf32>
    %65 = vector.extract_strided_slice %0 {offsets = [1, 0], sizes = [1, 512], strides = [1, 1]} : vector<8x512xf32> to vector<1x512xf32>
    %66 = vector.broadcast %64 : vector<4x1xf32> to vector<4x512xf32>
    %67 = vector.broadcast %65 : vector<1x512xf32> to vector<4x512xf32>
    %68 = arith.mulf %66, %67 : vector<4x512xf32>
    %69 = arith.addf %63, %68 : vector<4x512xf32>
    %70 = vector.extract_strided_slice %58 {offsets = [0, 2], sizes = [4, 1], strides = [1, 1]} : vector<4x8xf32> to vector<4x1xf32>
    %71 = vector.extract_strided_slice %0 {offsets = [2, 0], sizes = [1, 512], strides = [1, 1]} : vector<8x512xf32> to vector<1x512xf32>
    %72 = vector.broadcast %70 : vector<4x1xf32> to vector<4x512xf32>
    %73 = vector.broadcast %71 : vector<1x512xf32> to vector<4x512xf32>
    %74 = arith.mulf %72, %73 : vector<4x512xf32>
    %75 = arith.addf %69, %74 : vector<4x512xf32>
    %76 = vector.extract_strided_slice %58 {offsets = [0, 3], sizes = [4, 1], strides = [1, 1]} : vector<4x8xf32> to vector<4x1xf32>
    %77 = vector.extract_strided_slice %0 {offsets = [3, 0], sizes = [1, 512], strides = [1, 1]} : vector<8x512xf32> to vector<1x512xf32>
    %78 = vector.broadcast %76 : vector<4x1xf32> to vector<4x512xf32>
    %79 = vector.broadcast %77 : vector<1x512xf32> to vector<4x512xf32>
    %80 = arith.mulf %78, %79 : vector<4x512xf32>
    %81 = arith.addf %75, %80 : vector<4x512xf32>
    %82 = vector.extract_strided_slice %58 {offsets = [0, 4], sizes = [4, 1], strides = [1, 1]} : vector<4x8xf32> to vector<4x1xf32>
    %83 = vector.extract_strided_slice %0 {offsets = [4, 0], sizes = [1, 512], strides = [1, 1]} : vector<8x512xf32> to vector<1x512xf32>
    %84 = vector.broadcast %82 : vector<4x1xf32> to vector<4x512xf32>
    %85 = vector.broadcast %83 : vector<1x512xf32> to vector<4x512xf32>
    %86 = arith.mulf %84, %85 : vector<4x512xf32>
    %87 = arith.addf %81, %86 : vector<4x512xf32>
    %88 = vector.extract_strided_slice %58 {offsets = [0, 5], sizes = [4, 1], strides = [1, 1]} : vector<4x8xf32> to vector<4x1xf32>
    %89 = vector.extract_strided_slice %0 {offsets = [5, 0], sizes = [1, 512], strides = [1, 1]} : vector<8x512xf32> to vector<1x512xf32>
    %90 = vector.broadcast %88 : vector<4x1xf32> to vector<4x512xf32>
    %91 = vector.broadcast %89 : vector<1x512xf32> to vector<4x512xf32>
    %92 = arith.mulf %90, %91 : vector<4x512xf32>
    %93 = arith.addf %87, %92 : vector<4x512xf32>
    %94 = vector.extract_strided_slice %58 {offsets = [0, 6], sizes = [4, 1], strides = [1, 1]} : vector<4x8xf32> to vector<4x1xf32>
    %95 = vector.extract_strided_slice %0 {offsets = [6, 0], sizes = [1, 512], strides = [1, 1]} : vector<8x512xf32> to vector<1x512xf32>
    %96 = vector.broadcast %94 : vector<4x1xf32> to vector<4x512xf32>
    %97 = vector.broadcast %95 : vector<1x512xf32> to vector<4x512xf32>
    %98 = arith.mulf %96, %97 : vector<4x512xf32>
    %99 = arith.addf %93, %98 : vector<4x512xf32>
    %100 = vector.extract_strided_slice %58 {offsets = [0, 7], sizes = [4, 1], strides = [1, 1]} : vector<4x8xf32> to vector<4x1xf32>
    %101 = vector.extract_strided_slice %0 {offsets = [7, 0], sizes = [1, 512], strides = [1, 1]} : vector<8x512xf32> to vector<1x512xf32>
    %102 = vector.broadcast %100 : vector<4x1xf32> to vector<4x512xf32>
    %103 = vector.broadcast %101 : vector<1x512xf32> to vector<4x512xf32>
    %104 = arith.mulf %102, %103 : vector<4x512xf32>
    %105 = arith.addf %99, %104 : vector<4x512xf32>
    %c0_13 = arith.constant 0 : index
    %c0_14 = arith.constant 0 : index
    %106 = vector.load %arg3[%c0_13, %c0_14] : memref<4x1xf32, #tpu.memory_space<vmem>>, vector<4x1xf32>
    %107 = vector.broadcast %106 : vector<4x1xf32> to vector<4x512xf32>
    %108 = arith.addf %105, %107 : vector<4x512xf32>
    %cst = arith.constant 5.000000e-01 : f32
    %109 = vector.broadcast %cst : f32 to vector<4x512xf32>
    %110 = arith.mulf %109, %108 : vector<4x512xf32>
    %111 = math.tanh %110 : vector<4x512xf32>
    %cst_15 = arith.constant 5.000000e-01 : f32
    %112 = vector.broadcast %cst_15 : f32 to vector<4x512xf32>
    %113 = arith.mulf %112, %111 : vector<4x512xf32>
    %cst_16 = arith.constant 5.000000e-01 : f32
    %114 = vector.broadcast %cst_16 : f32 to vector<4x512xf32>
    %115 = arith.addf %113, %114 : vector<4x512xf32>
    %c0_17 = arith.constant 0 : index
    %c0_18 = arith.constant 0 : index
    %c0_19 = arith.constant 0 : index
    %116 = vector.load %arg8[%c0_17, %c0_18, %c0_19] : memref<4x8x4xf32, #tpu.memory_space<vmem>>, vector<1x8x4xf32>
    %117 = vector.shape_cast %116 : vector<1x8x4xf32> to vector<8x4xf32>
    %118 = vector.extract_strided_slice %117 {offsets = [0, 0], sizes = [8, 1], strides = [1, 1]} : vector<8x4xf32> to vector<8x1xf32>
    %119 = vector.extract_strided_slice %115 {offsets = [0, 0], sizes = [1, 512], strides = [1, 1]} : vector<4x512xf32> to vector<1x512xf32>
    %120 = vector.broadcast %118 : vector<8x1xf32> to vector<8x512xf32>
    %121 = vector.broadcast %119 : vector<1x512xf32> to vector<8x512xf32>
    %122 = arith.mulf %120, %121 : vector<8x512xf32>
    %123 = vector.extract_strided_slice %117 {offsets = [0, 1], sizes = [8, 1], strides = [1, 1]} : vector<8x4xf32> to vector<8x1xf32>
    %124 = vector.extract_strided_slice %115 {offsets = [1, 0], sizes = [1, 512], strides = [1, 1]} : vector<4x512xf32> to vector<1x512xf32>
    %125 = vector.broadcast %123 : vector<8x1xf32> to vector<8x512xf32>
    %126 = vector.broadcast %124 : vector<1x512xf32> to vector<8x512xf32>
    %127 = arith.mulf %125, %126 : vector<8x512xf32>
    %128 = arith.addf %122, %127 : vector<8x512xf32>
    %129 = vector.extract_strided_slice %117 {offsets = [0, 2], sizes = [8, 1], strides = [1, 1]} : vector<8x4xf32> to vector<8x1xf32>
    %130 = vector.extract_strided_slice %115 {offsets = [2, 0], sizes = [1, 512], strides = [1, 1]} : vector<4x512xf32> to vector<1x512xf32>
    %131 = vector.broadcast %129 : vector<8x1xf32> to vector<8x512xf32>
    %132 = vector.broadcast %130 : vector<1x512xf32> to vector<8x512xf32>
    %133 = arith.mulf %131, %132 : vector<8x512xf32>
    %134 = arith.addf %128, %133 : vector<8x512xf32>
    %135 = vector.extract_strided_slice %117 {offsets = [0, 3], sizes = [8, 1], strides = [1, 1]} : vector<8x4xf32> to vector<8x1xf32>
    %136 = vector.extract_strided_slice %115 {offsets = [3, 0], sizes = [1, 512], strides = [1, 1]} : vector<4x512xf32> to vector<1x512xf32>
    %137 = vector.broadcast %135 : vector<8x1xf32> to vector<8x512xf32>
    %138 = vector.broadcast %136 : vector<1x512xf32> to vector<8x512xf32>
    %139 = arith.mulf %137, %138 : vector<8x512xf32>
    %140 = arith.addf %134, %139 : vector<8x512xf32>
    %c0_20 = arith.constant 0 : index
    %c0_21 = arith.constant 0 : index
    %141 = vector.load %arg9[%c0_20, %c0_21] : memref<8x1xf32, #tpu.memory_space<vmem>>, vector<8x1xf32>
    %142 = vector.broadcast %141 : vector<8x1xf32> to vector<8x512xf32>
    %143 = arith.addf %140, %142 : vector<8x512xf32>
    %c0_22 = arith.constant 0 : index
    %c0_23 = arith.constant 0 : index
    %c0_24 = arith.constant 0 : index
    %144 = vector.load %arg4[%c0_22, %c0_23, %c0_24] : memref<3x4x4xf32, #tpu.memory_space<vmem>>, vector<1x4x4xf32>
    %145 = vector.shape_cast %144 : vector<1x4x4xf32> to vector<4x4xf32>
    %c1_i32_25 = arith.constant 1 : i32
    %146 = tpu.dynamic_rotate %115 by %c1_i32_25 dim 1 : vector<4x512xf32>, i32 -> vector<4x512xf32>
    %c511_i32 = arith.constant 511 : i32
    %147 = tpu.dynamic_rotate %115 by %c511_i32 dim 1 : vector<4x512xf32>, i32 -> vector<4x512xf32>
    %148 = arith.mulf %39, %146 : vector<4x512xf32>
    %149 = arith.addf %115, %148 : vector<4x512xf32>
    %150 = arith.mulf %45, %147 : vector<4x512xf32>
    %151 = arith.addf %149, %150 : vector<4x512xf32>
    %c16_i32_26 = arith.constant 16 : i32
    %152 = tpu.dynamic_rotate %151 by %c16_i32_26 dim 1 : vector<4x512xf32>, i32 -> vector<4x512xf32>
    %c496_i32 = arith.constant 496 : i32
    %153 = tpu.dynamic_rotate %151 by %c496_i32 dim 1 : vector<4x512xf32>, i32 -> vector<4x512xf32>
    %154 = arith.mulf %51, %152 : vector<4x512xf32>
    %155 = arith.addf %151, %154 : vector<4x512xf32>
    %156 = arith.mulf %57, %153 : vector<4x512xf32>
    %157 = arith.addf %155, %156 : vector<4x512xf32>
    %158 = vector.extract_strided_slice %145 {offsets = [0, 0], sizes = [4, 1], strides = [1, 1]} : vector<4x4xf32> to vector<4x1xf32>
    %159 = vector.extract_strided_slice %157 {offsets = [0, 0], sizes = [1, 512], strides = [1, 1]} : vector<4x512xf32> to vector<1x512xf32>
    %160 = vector.broadcast %158 : vector<4x1xf32> to vector<4x512xf32>
    %161 = vector.broadcast %159 : vector<1x512xf32> to vector<4x512xf32>
    %162 = arith.mulf %160, %161 : vector<4x512xf32>
    %163 = vector.extract_strided_slice %145 {offsets = [0, 1], sizes = [4, 1], strides = [1, 1]} : vector<4x4xf32> to vector<4x1xf32>
    %164 = vector.extract_strided_slice %157 {offsets = [1, 0], sizes = [1, 512], strides = [1, 1]} : vector<4x512xf32> to vector<1x512xf32>
    %165 = vector.broadcast %163 : vector<4x1xf32> to vector<4x512xf32>
    %166 = vector.broadcast %164 : vector<1x512xf32> to vector<4x512xf32>
    %167 = arith.mulf %165, %166 : vector<4x512xf32>
    %168 = arith.addf %162, %167 : vector<4x512xf32>
    %169 = vector.extract_strided_slice %145 {offsets = [0, 2], sizes = [4, 1], strides = [1, 1]} : vector<4x4xf32> to vector<4x1xf32>
    %170 = vector.extract_strided_slice %157 {offsets = [2, 0], sizes = [1, 512], strides = [1, 1]} : vector<4x512xf32> to vector<1x512xf32>
    %171 = vector.broadcast %169 : vector<4x1xf32> to vector<4x512xf32>
    %172 = vector.broadcast %170 : vector<1x512xf32> to vector<4x512xf32>
    %173 = arith.mulf %171, %172 : vector<4x512xf32>
    %174 = arith.addf %168, %173 : vector<4x512xf32>
    %175 = vector.extract_strided_slice %145 {offsets = [0, 3], sizes = [4, 1], strides = [1, 1]} : vector<4x4xf32> to vector<4x1xf32>
    %176 = vector.extract_strided_slice %157 {offsets = [3, 0], sizes = [1, 512], strides = [1, 1]} : vector<4x512xf32> to vector<1x512xf32>
    %177 = vector.broadcast %175 : vector<4x1xf32> to vector<4x512xf32>
    %178 = vector.broadcast %176 : vector<1x512xf32> to vector<4x512xf32>
    %179 = arith.mulf %177, %178 : vector<4x512xf32>
    %180 = arith.addf %174, %179 : vector<4x512xf32>
    %c0_27 = arith.constant 0 : index
    %c0_28 = arith.constant 0 : index
    %c0_29 = arith.constant 0 : index
    %181 = vector.load %arg5[%c0_27, %c0_28, %c0_29] : memref<3x4x1xf32, #tpu.memory_space<vmem>>, vector<1x4x1xf32>
    %182 = vector.shape_cast %181 : vector<1x4x1xf32> to vector<4x1xf32>
    %183 = vector.broadcast %182 : vector<4x1xf32> to vector<4x512xf32>
    %184 = arith.addf %180, %183 : vector<4x512xf32>
    %cst_30 = arith.constant 5.000000e-01 : f32
    %185 = vector.broadcast %cst_30 : f32 to vector<4x512xf32>
    %186 = arith.mulf %185, %184 : vector<4x512xf32>
    %187 = math.tanh %186 : vector<4x512xf32>
    %cst_31 = arith.constant 5.000000e-01 : f32
    %188 = vector.broadcast %cst_31 : f32 to vector<4x512xf32>
    %189 = arith.mulf %188, %187 : vector<4x512xf32>
    %cst_32 = arith.constant 5.000000e-01 : f32
    %190 = vector.broadcast %cst_32 : f32 to vector<4x512xf32>
    %191 = arith.addf %189, %190 : vector<4x512xf32>
    %c0_33 = arith.constant 0 : index
    %c0_34 = arith.constant 0 : index
    %c0_35 = arith.constant 0 : index
    %192 = vector.load %arg6[%c0_33, %c0_34, %c0_35] : memref<3x4x4xf32, #tpu.memory_space<vmem>>, vector<1x4x4xf32>
    %193 = vector.shape_cast %192 : vector<1x4x4xf32> to vector<4x4xf32>
    %c1_i32_36 = arith.constant 1 : i32
    %194 = tpu.dynamic_rotate %191 by %c1_i32_36 dim 1 : vector<4x512xf32>, i32 -> vector<4x512xf32>
    %c511_i32_37 = arith.constant 511 : i32
    %195 = tpu.dynamic_rotate %191 by %c511_i32_37 dim 1 : vector<4x512xf32>, i32 -> vector<4x512xf32>
    %196 = arith.mulf %39, %194 : vector<4x512xf32>
    %197 = arith.addf %191, %196 : vector<4x512xf32>
    %198 = arith.mulf %45, %195 : vector<4x512xf32>
    %199 = arith.addf %197, %198 : vector<4x512xf32>
    %c16_i32_38 = arith.constant 16 : i32
    %200 = tpu.dynamic_rotate %199 by %c16_i32_38 dim 1 : vector<4x512xf32>, i32 -> vector<4x512xf32>
    %c496_i32_39 = arith.constant 496 : i32
    %201 = tpu.dynamic_rotate %199 by %c496_i32_39 dim 1 : vector<4x512xf32>, i32 -> vector<4x512xf32>
    %202 = arith.mulf %51, %200 : vector<4x512xf32>
    %203 = arith.addf %199, %202 : vector<4x512xf32>
    %204 = arith.mulf %57, %201 : vector<4x512xf32>
    %205 = arith.addf %203, %204 : vector<4x512xf32>
    %cst_40 = arith.constant 0.111111112 : f32
    %206 = vector.broadcast %cst_40 : f32 to vector<4x512xf32>
    %207 = arith.mulf %205, %206 : vector<4x512xf32>
    %208 = arith.subf %191, %207 : vector<4x512xf32>
    %209 = vector.extract_strided_slice %193 {offsets = [0, 0], sizes = [4, 1], strides = [1, 1]} : vector<4x4xf32> to vector<4x1xf32>
    %210 = vector.extract_strided_slice %208 {offsets = [0, 0], sizes = [1, 512], strides = [1, 1]} : vector<4x512xf32> to vector<1x512xf32>
    %211 = vector.broadcast %209 : vector<4x1xf32> to vector<4x512xf32>
    %212 = vector.broadcast %210 : vector<1x512xf32> to vector<4x512xf32>
    %213 = arith.mulf %211, %212 : vector<4x512xf32>
    %214 = vector.extract_strided_slice %193 {offsets = [0, 1], sizes = [4, 1], strides = [1, 1]} : vector<4x4xf32> to vector<4x1xf32>
    %215 = vector.extract_strided_slice %208 {offsets = [1, 0], sizes = [1, 512], strides = [1, 1]} : vector<4x512xf32> to vector<1x512xf32>
    %216 = vector.broadcast %214 : vector<4x1xf32> to vector<4x512xf32>
    %217 = vector.broadcast %215 : vector<1x512xf32> to vector<4x512xf32>
    %218 = arith.mulf %216, %217 : vector<4x512xf32>
    %219 = arith.addf %213, %218 : vector<4x512xf32>
    %220 = vector.extract_strided_slice %193 {offsets = [0, 2], sizes = [4, 1], strides = [1, 1]} : vector<4x4xf32> to vector<4x1xf32>
    %221 = vector.extract_strided_slice %208 {offsets = [2, 0], sizes = [1, 512], strides = [1, 1]} : vector<4x512xf32> to vector<1x512xf32>
    %222 = vector.broadcast %220 : vector<4x1xf32> to vector<4x512xf32>
    %223 = vector.broadcast %221 : vector<1x512xf32> to vector<4x512xf32>
    %224 = arith.mulf %222, %223 : vector<4x512xf32>
    %225 = arith.addf %219, %224 : vector<4x512xf32>
    %226 = vector.extract_strided_slice %193 {offsets = [0, 3], sizes = [4, 1], strides = [1, 1]} : vector<4x4xf32> to vector<4x1xf32>
    %227 = vector.extract_strided_slice %208 {offsets = [3, 0], sizes = [1, 512], strides = [1, 1]} : vector<4x512xf32> to vector<1x512xf32>
    %228 = vector.broadcast %226 : vector<4x1xf32> to vector<4x512xf32>
    %229 = vector.broadcast %227 : vector<1x512xf32> to vector<4x512xf32>
    %230 = arith.mulf %228, %229 : vector<4x512xf32>
    %231 = arith.addf %225, %230 : vector<4x512xf32>
    %c0_41 = arith.constant 0 : index
    %c0_42 = arith.constant 0 : index
    %c0_43 = arith.constant 0 : index
    %232 = vector.load %arg7[%c0_41, %c0_42, %c0_43] : memref<3x4x1xf32, #tpu.memory_space<vmem>>, vector<1x4x1xf32>
    %233 = vector.shape_cast %232 : vector<1x4x1xf32> to vector<4x1xf32>
    %234 = vector.broadcast %233 : vector<4x1xf32> to vector<4x512xf32>
    %235 = arith.addf %231, %234 : vector<4x512xf32>
    %cst_44 = arith.constant 5.000000e-01 : f32
    %236 = vector.broadcast %cst_44 : f32 to vector<4x512xf32>
    %237 = arith.mulf %236, %235 : vector<4x512xf32>
    %238 = math.tanh %237 : vector<4x512xf32>
    %cst_45 = arith.constant 5.000000e-01 : f32
    %239 = vector.broadcast %cst_45 : f32 to vector<4x512xf32>
    %240 = arith.mulf %239, %238 : vector<4x512xf32>
    %cst_46 = arith.constant 5.000000e-01 : f32
    %241 = vector.broadcast %cst_46 : f32 to vector<4x512xf32>
    %242 = arith.addf %240, %241 : vector<4x512xf32>
    %c1 = arith.constant 1 : index
    %c0_47 = arith.constant 0 : index
    %c0_48 = arith.constant 0 : index
    %243 = vector.load %arg8[%c1, %c0_47, %c0_48] : memref<4x8x4xf32, #tpu.memory_space<vmem>>, vector<1x8x4xf32>
    %244 = vector.shape_cast %243 : vector<1x8x4xf32> to vector<8x4xf32>
    %245 = arith.addf %191, %242 : vector<4x512xf32>
    %246 = vector.extract_strided_slice %244 {offsets = [0, 0], sizes = [8, 1], strides = [1, 1]} : vector<8x4xf32> to vector<8x1xf32>
    %247 = vector.extract_strided_slice %245 {offsets = [0, 0], sizes = [1, 512], strides = [1, 1]} : vector<4x512xf32> to vector<1x512xf32>
    %248 = vector.broadcast %246 : vector<8x1xf32> to vector<8x512xf32>
    %249 = vector.broadcast %247 : vector<1x512xf32> to vector<8x512xf32>
    %250 = arith.mulf %248, %249 : vector<8x512xf32>
    %251 = vector.extract_strided_slice %244 {offsets = [0, 1], sizes = [8, 1], strides = [1, 1]} : vector<8x4xf32> to vector<8x1xf32>
    %252 = vector.extract_strided_slice %245 {offsets = [1, 0], sizes = [1, 512], strides = [1, 1]} : vector<4x512xf32> to vector<1x512xf32>
    %253 = vector.broadcast %251 : vector<8x1xf32> to vector<8x512xf32>
    %254 = vector.broadcast %252 : vector<1x512xf32> to vector<8x512xf32>
    %255 = arith.mulf %253, %254 : vector<8x512xf32>
    %256 = arith.addf %250, %255 : vector<8x512xf32>
    %257 = vector.extract_strided_slice %244 {offsets = [0, 2], sizes = [8, 1], strides = [1, 1]} : vector<8x4xf32> to vector<8x1xf32>
    %258 = vector.extract_strided_slice %245 {offsets = [2, 0], sizes = [1, 512], strides = [1, 1]} : vector<4x512xf32> to vector<1x512xf32>
    %259 = vector.broadcast %257 : vector<8x1xf32> to vector<8x512xf32>
    %260 = vector.broadcast %258 : vector<1x512xf32> to vector<8x512xf32>
    %261 = arith.mulf %259, %260 : vector<8x512xf32>
    %262 = arith.addf %256, %261 : vector<8x512xf32>
    %263 = vector.extract_strided_slice %244 {offsets = [0, 3], sizes = [8, 1], strides = [1, 1]} : vector<8x4xf32> to vector<8x1xf32>
    %264 = vector.extract_strided_slice %245 {offsets = [3, 0], sizes = [1, 512], strides = [1, 1]} : vector<4x512xf32> to vector<1x512xf32>
    %265 = vector.broadcast %263 : vector<8x1xf32> to vector<8x512xf32>
    %266 = vector.broadcast %264 : vector<1x512xf32> to vector<8x512xf32>
    %267 = arith.mulf %265, %266 : vector<8x512xf32>
    %268 = arith.addf %262, %267 : vector<8x512xf32>
    %269 = arith.addf %143, %268 : vector<8x512xf32>
    %c1_49 = arith.constant 1 : index
    %c0_50 = arith.constant 0 : index
    %c0_51 = arith.constant 0 : index
    %270 = vector.load %arg4[%c1_49, %c0_50, %c0_51] : memref<3x4x4xf32, #tpu.memory_space<vmem>>, vector<1x4x4xf32>
    %271 = vector.shape_cast %270 : vector<1x4x4xf32> to vector<4x4xf32>
    %c1_i32_52 = arith.constant 1 : i32
    %272 = tpu.dynamic_rotate %191 by %c1_i32_52 dim 1 : vector<4x512xf32>, i32 -> vector<4x512xf32>
    %c511_i32_53 = arith.constant 511 : i32
    %273 = tpu.dynamic_rotate %191 by %c511_i32_53 dim 1 : vector<4x512xf32>, i32 -> vector<4x512xf32>
    %274 = arith.mulf %39, %272 : vector<4x512xf32>
    %275 = arith.addf %191, %274 : vector<4x512xf32>
    %276 = arith.mulf %45, %273 : vector<4x512xf32>
    %277 = arith.addf %275, %276 : vector<4x512xf32>
    %c16_i32_54 = arith.constant 16 : i32
    %278 = tpu.dynamic_rotate %277 by %c16_i32_54 dim 1 : vector<4x512xf32>, i32 -> vector<4x512xf32>
    %c496_i32_55 = arith.constant 496 : i32
    %279 = tpu.dynamic_rotate %277 by %c496_i32_55 dim 1 : vector<4x512xf32>, i32 -> vector<4x512xf32>
    %280 = arith.mulf %51, %278 : vector<4x512xf32>
    %281 = arith.addf %277, %280 : vector<4x512xf32>
    %282 = arith.mulf %57, %279 : vector<4x512xf32>
    %283 = arith.addf %281, %282 : vector<4x512xf32>
    %284 = vector.extract_strided_slice %271 {offsets = [0, 0], sizes = [4, 1], strides = [1, 1]} : vector<4x4xf32> to vector<4x1xf32>
    %285 = vector.extract_strided_slice %283 {offsets = [0, 0], sizes = [1, 512], strides = [1, 1]} : vector<4x512xf32> to vector<1x512xf32>
    %286 = vector.broadcast %284 : vector<4x1xf32> to vector<4x512xf32>
    %287 = vector.broadcast %285 : vector<1x512xf32> to vector<4x512xf32>
    %288 = arith.mulf %286, %287 : vector<4x512xf32>
    %289 = vector.extract_strided_slice %271 {offsets = [0, 1], sizes = [4, 1], strides = [1, 1]} : vector<4x4xf32> to vector<4x1xf32>
    %290 = vector.extract_strided_slice %283 {offsets = [1, 0], sizes = [1, 512], strides = [1, 1]} : vector<4x512xf32> to vector<1x512xf32>
    %291 = vector.broadcast %289 : vector<4x1xf32> to vector<4x512xf32>
    %292 = vector.broadcast %290 : vector<1x512xf32> to vector<4x512xf32>
    %293 = arith.mulf %291, %292 : vector<4x512xf32>
    %294 = arith.addf %288, %293 : vector<4x512xf32>
    %295 = vector.extract_strided_slice %271 {offsets = [0, 2], sizes = [4, 1], strides = [1, 1]} : vector<4x4xf32> to vector<4x1xf32>
    %296 = vector.extract_strided_slice %283 {offsets = [2, 0], sizes = [1, 512], strides = [1, 1]} : vector<4x512xf32> to vector<1x512xf32>
    %297 = vector.broadcast %295 : vector<4x1xf32> to vector<4x512xf32>
    %298 = vector.broadcast %296 : vector<1x512xf32> to vector<4x512xf32>
    %299 = arith.mulf %297, %298 : vector<4x512xf32>
    %300 = arith.addf %294, %299 : vector<4x512xf32>
    %301 = vector.extract_strided_slice %271 {offsets = [0, 3], sizes = [4, 1], strides = [1, 1]} : vector<4x4xf32> to vector<4x1xf32>
    %302 = vector.extract_strided_slice %283 {offsets = [3, 0], sizes = [1, 512], strides = [1, 1]} : vector<4x512xf32> to vector<1x512xf32>
    %303 = vector.broadcast %301 : vector<4x1xf32> to vector<4x512xf32>
    %304 = vector.broadcast %302 : vector<1x512xf32> to vector<4x512xf32>
    %305 = arith.mulf %303, %304 : vector<4x512xf32>
    %306 = arith.addf %300, %305 : vector<4x512xf32>
    %c1_56 = arith.constant 1 : index
    %c0_57 = arith.constant 0 : index
    %c0_58 = arith.constant 0 : index
    %307 = vector.load %arg5[%c1_56, %c0_57, %c0_58] : memref<3x4x1xf32, #tpu.memory_space<vmem>>, vector<1x4x1xf32>
    %308 = vector.shape_cast %307 : vector<1x4x1xf32> to vector<4x1xf32>
    %309 = vector.broadcast %308 : vector<4x1xf32> to vector<4x512xf32>
    %310 = arith.addf %306, %309 : vector<4x512xf32>
    %cst_59 = arith.constant 5.000000e-01 : f32
    %311 = vector.broadcast %cst_59 : f32 to vector<4x512xf32>
    %312 = arith.mulf %311, %310 : vector<4x512xf32>
    %313 = math.tanh %312 : vector<4x512xf32>
    %cst_60 = arith.constant 5.000000e-01 : f32
    %314 = vector.broadcast %cst_60 : f32 to vector<4x512xf32>
    %315 = arith.mulf %314, %313 : vector<4x512xf32>
    %cst_61 = arith.constant 5.000000e-01 : f32
    %316 = vector.broadcast %cst_61 : f32 to vector<4x512xf32>
    %317 = arith.addf %315, %316 : vector<4x512xf32>
    %c1_62 = arith.constant 1 : index
    %c0_63 = arith.constant 0 : index
    %c0_64 = arith.constant 0 : index
    %318 = vector.load %arg6[%c1_62, %c0_63, %c0_64] : memref<3x4x4xf32, #tpu.memory_space<vmem>>, vector<1x4x4xf32>
    %319 = vector.shape_cast %318 : vector<1x4x4xf32> to vector<4x4xf32>
    %c1_i32_65 = arith.constant 1 : i32
    %320 = tpu.dynamic_rotate %317 by %c1_i32_65 dim 1 : vector<4x512xf32>, i32 -> vector<4x512xf32>
    %c511_i32_66 = arith.constant 511 : i32
    %321 = tpu.dynamic_rotate %317 by %c511_i32_66 dim 1 : vector<4x512xf32>, i32 -> vector<4x512xf32>
    %322 = arith.mulf %39, %320 : vector<4x512xf32>
    %323 = arith.addf %317, %322 : vector<4x512xf32>
    %324 = arith.mulf %45, %321 : vector<4x512xf32>
    %325 = arith.addf %323, %324 : vector<4x512xf32>
    %c16_i32_67 = arith.constant 16 : i32
    %326 = tpu.dynamic_rotate %325 by %c16_i32_67 dim 1 : vector<4x512xf32>, i32 -> vector<4x512xf32>
    %c496_i32_68 = arith.constant 496 : i32
    %327 = tpu.dynamic_rotate %325 by %c496_i32_68 dim 1 : vector<4x512xf32>, i32 -> vector<4x512xf32>
    %328 = arith.mulf %51, %326 : vector<4x512xf32>
    %329 = arith.addf %325, %328 : vector<4x512xf32>
    %330 = arith.mulf %57, %327 : vector<4x512xf32>
    %331 = arith.addf %329, %330 : vector<4x512xf32>
    %cst_69 = arith.constant 0.111111112 : f32
    %332 = vector.broadcast %cst_69 : f32 to vector<4x512xf32>
    %333 = arith.mulf %331, %332 : vector<4x512xf32>
    %334 = arith.subf %317, %333 : vector<4x512xf32>
    %335 = vector.extract_strided_slice %319 {offsets = [0, 0], sizes = [4, 1], strides = [1, 1]} : vector<4x4xf32> to vector<4x1xf32>
    %336 = vector.extract_strided_slice %334 {offsets = [0, 0], sizes = [1, 512], strides = [1, 1]} : vector<4x512xf32> to vector<1x512xf32>
    %337 = vector.broadcast %335 : vector<4x1xf32> to vector<4x512xf32>
    %338 = vector.broadcast %336 : vector<1x512xf32> to vector<4x512xf32>
    %339 = arith.mulf %337, %338 : vector<4x512xf32>
    %340 = vector.extract_strided_slice %319 {offsets = [0, 1], sizes = [4, 1], strides = [1, 1]} : vector<4x4xf32> to vector<4x1xf32>
    %341 = vector.extract_strided_slice %334 {offsets = [1, 0], sizes = [1, 512], strides = [1, 1]} : vector<4x512xf32> to vector<1x512xf32>
    %342 = vector.broadcast %340 : vector<4x1xf32> to vector<4x512xf32>
    %343 = vector.broadcast %341 : vector<1x512xf32> to vector<4x512xf32>
    %344 = arith.mulf %342, %343 : vector<4x512xf32>
    %345 = arith.addf %339, %344 : vector<4x512xf32>
    %346 = vector.extract_strided_slice %319 {offsets = [0, 2], sizes = [4, 1], strides = [1, 1]} : vector<4x4xf32> to vector<4x1xf32>
    %347 = vector.extract_strided_slice %334 {offsets = [2, 0], sizes = [1, 512], strides = [1, 1]} : vector<4x512xf32> to vector<1x512xf32>
    %348 = vector.broadcast %346 : vector<4x1xf32> to vector<4x512xf32>
    %349 = vector.broadcast %347 : vector<1x512xf32> to vector<4x512xf32>
    %350 = arith.mulf %348, %349 : vector<4x512xf32>
    %351 = arith.addf %345, %350 : vector<4x512xf32>
    %352 = vector.extract_strided_slice %319 {offsets = [0, 3], sizes = [4, 1], strides = [1, 1]} : vector<4x4xf32> to vector<4x1xf32>
    %353 = vector.extract_strided_slice %334 {offsets = [3, 0], sizes = [1, 512], strides = [1, 1]} : vector<4x512xf32> to vector<1x512xf32>
    %354 = vector.broadcast %352 : vector<4x1xf32> to vector<4x512xf32>
    %355 = vector.broadcast %353 : vector<1x512xf32> to vector<4x512xf32>
    %356 = arith.mulf %354, %355 : vector<4x512xf32>
    %357 = arith.addf %351, %356 : vector<4x512xf32>
    %c1_70 = arith.constant 1 : index
    %c0_71 = arith.constant 0 : index
    %c0_72 = arith.constant 0 : index
    %358 = vector.load %arg7[%c1_70, %c0_71, %c0_72] : memref<3x4x1xf32, #tpu.memory_space<vmem>>, vector<1x4x1xf32>
    %359 = vector.shape_cast %358 : vector<1x4x1xf32> to vector<4x1xf32>
    %360 = vector.broadcast %359 : vector<4x1xf32> to vector<4x512xf32>
    %361 = arith.addf %357, %360 : vector<4x512xf32>
    %cst_73 = arith.constant 5.000000e-01 : f32
    %362 = vector.broadcast %cst_73 : f32 to vector<4x512xf32>
    %363 = arith.mulf %362, %361 : vector<4x512xf32>
    %364 = math.tanh %363 : vector<4x512xf32>
    %cst_74 = arith.constant 5.000000e-01 : f32
    %365 = vector.broadcast %cst_74 : f32 to vector<4x512xf32>
    %366 = arith.mulf %365, %364 : vector<4x512xf32>
    %cst_75 = arith.constant 5.000000e-01 : f32
    %367 = vector.broadcast %cst_75 : f32 to vector<4x512xf32>
    %368 = arith.addf %366, %367 : vector<4x512xf32>
    %c2 = arith.constant 2 : index
    %c0_76 = arith.constant 0 : index
    %c0_77 = arith.constant 0 : index
    %369 = vector.load %arg8[%c2, %c0_76, %c0_77] : memref<4x8x4xf32, #tpu.memory_space<vmem>>, vector<1x8x4xf32>
    %370 = vector.shape_cast %369 : vector<1x8x4xf32> to vector<8x4xf32>
    %371 = arith.addf %317, %368 : vector<4x512xf32>
    %372 = vector.extract_strided_slice %370 {offsets = [0, 0], sizes = [8, 1], strides = [1, 1]} : vector<8x4xf32> to vector<8x1xf32>
    %373 = vector.extract_strided_slice %371 {offsets = [0, 0], sizes = [1, 512], strides = [1, 1]} : vector<4x512xf32> to vector<1x512xf32>
    %374 = vector.broadcast %372 : vector<8x1xf32> to vector<8x512xf32>
    %375 = vector.broadcast %373 : vector<1x512xf32> to vector<8x512xf32>
    %376 = arith.mulf %374, %375 : vector<8x512xf32>
    %377 = vector.extract_strided_slice %370 {offsets = [0, 1], sizes = [8, 1], strides = [1, 1]} : vector<8x4xf32> to vector<8x1xf32>
    %378 = vector.extract_strided_slice %371 {offsets = [1, 0], sizes = [1, 512], strides = [1, 1]} : vector<4x512xf32> to vector<1x512xf32>
    %379 = vector.broadcast %377 : vector<8x1xf32> to vector<8x512xf32>
    %380 = vector.broadcast %378 : vector<1x512xf32> to vector<8x512xf32>
    %381 = arith.mulf %379, %380 : vector<8x512xf32>
    %382 = arith.addf %376, %381 : vector<8x512xf32>
    %383 = vector.extract_strided_slice %370 {offsets = [0, 2], sizes = [8, 1], strides = [1, 1]} : vector<8x4xf32> to vector<8x1xf32>
    %384 = vector.extract_strided_slice %371 {offsets = [2, 0], sizes = [1, 512], strides = [1, 1]} : vector<4x512xf32> to vector<1x512xf32>
    %385 = vector.broadcast %383 : vector<8x1xf32> to vector<8x512xf32>
    %386 = vector.broadcast %384 : vector<1x512xf32> to vector<8x512xf32>
    %387 = arith.mulf %385, %386 : vector<8x512xf32>
    %388 = arith.addf %382, %387 : vector<8x512xf32>
    %389 = vector.extract_strided_slice %370 {offsets = [0, 3], sizes = [8, 1], strides = [1, 1]} : vector<8x4xf32> to vector<8x1xf32>
    %390 = vector.extract_strided_slice %371 {offsets = [3, 0], sizes = [1, 512], strides = [1, 1]} : vector<4x512xf32> to vector<1x512xf32>
    %391 = vector.broadcast %389 : vector<8x1xf32> to vector<8x512xf32>
    %392 = vector.broadcast %390 : vector<1x512xf32> to vector<8x512xf32>
    %393 = arith.mulf %391, %392 : vector<8x512xf32>
    %394 = arith.addf %388, %393 : vector<8x512xf32>
    %395 = arith.addf %269, %394 : vector<8x512xf32>
    %c2_78 = arith.constant 2 : index
    %c0_79 = arith.constant 0 : index
    %c0_80 = arith.constant 0 : index
    %396 = vector.load %arg4[%c2_78, %c0_79, %c0_80] : memref<3x4x4xf32, #tpu.memory_space<vmem>>, vector<1x4x4xf32>
    %397 = vector.shape_cast %396 : vector<1x4x4xf32> to vector<4x4xf32>
    %c1_i32_81 = arith.constant 1 : i32
    %398 = tpu.dynamic_rotate %317 by %c1_i32_81 dim 1 : vector<4x512xf32>, i32 -> vector<4x512xf32>
    %c511_i32_82 = arith.constant 511 : i32
    %399 = tpu.dynamic_rotate %317 by %c511_i32_82 dim 1 : vector<4x512xf32>, i32 -> vector<4x512xf32>
    %400 = arith.mulf %39, %398 : vector<4x512xf32>
    %401 = arith.addf %317, %400 : vector<4x512xf32>
    %402 = arith.mulf %45, %399 : vector<4x512xf32>
    %403 = arith.addf %401, %402 : vector<4x512xf32>
    %c16_i32_83 = arith.constant 16 : i32
    %404 = tpu.dynamic_rotate %403 by %c16_i32_83 dim 1 : vector<4x512xf32>, i32 -> vector<4x512xf32>
    %c496_i32_84 = arith.constant 496 : i32
    %405 = tpu.dynamic_rotate %403 by %c496_i32_84 dim 1 : vector<4x512xf32>, i32 -> vector<4x512xf32>
    %406 = arith.mulf %51, %404 : vector<4x512xf32>
    %407 = arith.addf %403, %406 : vector<4x512xf32>
    %408 = arith.mulf %57, %405 : vector<4x512xf32>
    %409 = arith.addf %407, %408 : vector<4x512xf32>
    %410 = vector.extract_strided_slice %397 {offsets = [0, 0], sizes = [4, 1], strides = [1, 1]} : vector<4x4xf32> to vector<4x1xf32>
    %411 = vector.extract_strided_slice %409 {offsets = [0, 0], sizes = [1, 512], strides = [1, 1]} : vector<4x512xf32> to vector<1x512xf32>
    %412 = vector.broadcast %410 : vector<4x1xf32> to vector<4x512xf32>
    %413 = vector.broadcast %411 : vector<1x512xf32> to vector<4x512xf32>
    %414 = arith.mulf %412, %413 : vector<4x512xf32>
    %415 = vector.extract_strided_slice %397 {offsets = [0, 1], sizes = [4, 1], strides = [1, 1]} : vector<4x4xf32> to vector<4x1xf32>
    %416 = vector.extract_strided_slice %409 {offsets = [1, 0], sizes = [1, 512], strides = [1, 1]} : vector<4x512xf32> to vector<1x512xf32>
    %417 = vector.broadcast %415 : vector<4x1xf32> to vector<4x512xf32>
    %418 = vector.broadcast %416 : vector<1x512xf32> to vector<4x512xf32>
    %419 = arith.mulf %417, %418 : vector<4x512xf32>
    %420 = arith.addf %414, %419 : vector<4x512xf32>
    %421 = vector.extract_strided_slice %397 {offsets = [0, 2], sizes = [4, 1], strides = [1, 1]} : vector<4x4xf32> to vector<4x1xf32>
    %422 = vector.extract_strided_slice %409 {offsets = [2, 0], sizes = [1, 512], strides = [1, 1]} : vector<4x512xf32> to vector<1x512xf32>
    %423 = vector.broadcast %421 : vector<4x1xf32> to vector<4x512xf32>
    %424 = vector.broadcast %422 : vector<1x512xf32> to vector<4x512xf32>
    %425 = arith.mulf %423, %424 : vector<4x512xf32>
    %426 = arith.addf %420, %425 : vector<4x512xf32>
    %427 = vector.extract_strided_slice %397 {offsets = [0, 3], sizes = [4, 1], strides = [1, 1]} : vector<4x4xf32> to vector<4x1xf32>
    %428 = vector.extract_strided_slice %409 {offsets = [3, 0], sizes = [1, 512], strides = [1, 1]} : vector<4x512xf32> to vector<1x512xf32>
    %429 = vector.broadcast %427 : vector<4x1xf32> to vector<4x512xf32>
    %430 = vector.broadcast %428 : vector<1x512xf32> to vector<4x512xf32>
    %431 = arith.mulf %429, %430 : vector<4x512xf32>
    %432 = arith.addf %426, %431 : vector<4x512xf32>
    %c2_85 = arith.constant 2 : index
    %c0_86 = arith.constant 0 : index
    %c0_87 = arith.constant 0 : index
    %433 = vector.load %arg5[%c2_85, %c0_86, %c0_87] : memref<3x4x1xf32, #tpu.memory_space<vmem>>, vector<1x4x1xf32>
    %434 = vector.shape_cast %433 : vector<1x4x1xf32> to vector<4x1xf32>
    %435 = vector.broadcast %434 : vector<4x1xf32> to vector<4x512xf32>
    %436 = arith.addf %432, %435 : vector<4x512xf32>
    %cst_88 = arith.constant 5.000000e-01 : f32
    %437 = vector.broadcast %cst_88 : f32 to vector<4x512xf32>
    %438 = arith.mulf %437, %436 : vector<4x512xf32>
    %439 = math.tanh %438 : vector<4x512xf32>
    %cst_89 = arith.constant 5.000000e-01 : f32
    %440 = vector.broadcast %cst_89 : f32 to vector<4x512xf32>
    %441 = arith.mulf %440, %439 : vector<4x512xf32>
    %cst_90 = arith.constant 5.000000e-01 : f32
    %442 = vector.broadcast %cst_90 : f32 to vector<4x512xf32>
    %443 = arith.addf %441, %442 : vector<4x512xf32>
    %c2_91 = arith.constant 2 : index
    %c0_92 = arith.constant 0 : index
    %c0_93 = arith.constant 0 : index
    %444 = vector.load %arg6[%c2_91, %c0_92, %c0_93] : memref<3x4x4xf32, #tpu.memory_space<vmem>>, vector<1x4x4xf32>
    %445 = vector.shape_cast %444 : vector<1x4x4xf32> to vector<4x4xf32>
    %c1_i32_94 = arith.constant 1 : i32
    %446 = tpu.dynamic_rotate %443 by %c1_i32_94 dim 1 : vector<4x512xf32>, i32 -> vector<4x512xf32>
    %c511_i32_95 = arith.constant 511 : i32
    %447 = tpu.dynamic_rotate %443 by %c511_i32_95 dim 1 : vector<4x512xf32>, i32 -> vector<4x512xf32>
    %448 = arith.mulf %39, %446 : vector<4x512xf32>
    %449 = arith.addf %443, %448 : vector<4x512xf32>
    %450 = arith.mulf %45, %447 : vector<4x512xf32>
    %451 = arith.addf %449, %450 : vector<4x512xf32>
    %c16_i32_96 = arith.constant 16 : i32
    %452 = tpu.dynamic_rotate %451 by %c16_i32_96 dim 1 : vector<4x512xf32>, i32 -> vector<4x512xf32>
    %c496_i32_97 = arith.constant 496 : i32
    %453 = tpu.dynamic_rotate %451 by %c496_i32_97 dim 1 : vector<4x512xf32>, i32 -> vector<4x512xf32>
    %454 = arith.mulf %51, %452 : vector<4x512xf32>
    %455 = arith.addf %451, %454 : vector<4x512xf32>
    %456 = arith.mulf %57, %453 : vector<4x512xf32>
    %457 = arith.addf %455, %456 : vector<4x512xf32>
    %cst_98 = arith.constant 0.111111112 : f32
    %458 = vector.broadcast %cst_98 : f32 to vector<4x512xf32>
    %459 = arith.mulf %457, %458 : vector<4x512xf32>
    %460 = arith.subf %443, %459 : vector<4x512xf32>
    %461 = vector.extract_strided_slice %445 {offsets = [0, 0], sizes = [4, 1], strides = [1, 1]} : vector<4x4xf32> to vector<4x1xf32>
    %462 = vector.extract_strided_slice %460 {offsets = [0, 0], sizes = [1, 512], strides = [1, 1]} : vector<4x512xf32> to vector<1x512xf32>
    %463 = vector.broadcast %461 : vector<4x1xf32> to vector<4x512xf32>
    %464 = vector.broadcast %462 : vector<1x512xf32> to vector<4x512xf32>
    %465 = arith.mulf %463, %464 : vector<4x512xf32>
    %466 = vector.extract_strided_slice %445 {offsets = [0, 1], sizes = [4, 1], strides = [1, 1]} : vector<4x4xf32> to vector<4x1xf32>
    %467 = vector.extract_strided_slice %460 {offsets = [1, 0], sizes = [1, 512], strides = [1, 1]} : vector<4x512xf32> to vector<1x512xf32>
    %468 = vector.broadcast %466 : vector<4x1xf32> to vector<4x512xf32>
    %469 = vector.broadcast %467 : vector<1x512xf32> to vector<4x512xf32>
    %470 = arith.mulf %468, %469 : vector<4x512xf32>
    %471 = arith.addf %465, %470 : vector<4x512xf32>
    %472 = vector.extract_strided_slice %445 {offsets = [0, 2], sizes = [4, 1], strides = [1, 1]} : vector<4x4xf32> to vector<4x1xf32>
    %473 = vector.extract_strided_slice %460 {offsets = [2, 0], sizes = [1, 512], strides = [1, 1]} : vector<4x512xf32> to vector<1x512xf32>
    %474 = vector.broadcast %472 : vector<4x1xf32> to vector<4x512xf32>
    %475 = vector.broadcast %473 : vector<1x512xf32> to vector<4x512xf32>
    %476 = arith.mulf %474, %475 : vector<4x512xf32>
    %477 = arith.addf %471, %476 : vector<4x512xf32>
    %478 = vector.extract_strided_slice %445 {offsets = [0, 3], sizes = [4, 1], strides = [1, 1]} : vector<4x4xf32> to vector<4x1xf32>
    %479 = vector.extract_strided_slice %460 {offsets = [3, 0], sizes = [1, 512], strides = [1, 1]} : vector<4x512xf32> to vector<1x512xf32>
    %480 = vector.broadcast %478 : vector<4x1xf32> to vector<4x512xf32>
    %481 = vector.broadcast %479 : vector<1x512xf32> to vector<4x512xf32>
    %482 = arith.mulf %480, %481 : vector<4x512xf32>
    %483 = arith.addf %477, %482 : vector<4x512xf32>
    %c2_99 = arith.constant 2 : index
    %c0_100 = arith.constant 0 : index
    %c0_101 = arith.constant 0 : index
    %484 = vector.load %arg7[%c2_99, %c0_100, %c0_101] : memref<3x4x1xf32, #tpu.memory_space<vmem>>, vector<1x4x1xf32>
    %485 = vector.shape_cast %484 : vector<1x4x1xf32> to vector<4x1xf32>
    %486 = vector.broadcast %485 : vector<4x1xf32> to vector<4x512xf32>
    %487 = arith.addf %483, %486 : vector<4x512xf32>
    %cst_102 = arith.constant 5.000000e-01 : f32
    %488 = vector.broadcast %cst_102 : f32 to vector<4x512xf32>
    %489 = arith.mulf %488, %487 : vector<4x512xf32>
    %490 = math.tanh %489 : vector<4x512xf32>
    %cst_103 = arith.constant 5.000000e-01 : f32
    %491 = vector.broadcast %cst_103 : f32 to vector<4x512xf32>
    %492 = arith.mulf %491, %490 : vector<4x512xf32>
    %cst_104 = arith.constant 5.000000e-01 : f32
    %493 = vector.broadcast %cst_104 : f32 to vector<4x512xf32>
    %494 = arith.addf %492, %493 : vector<4x512xf32>
    %c3 = arith.constant 3 : index
    %c0_105 = arith.constant 0 : index
    %c0_106 = arith.constant 0 : index
    %495 = vector.load %arg8[%c3, %c0_105, %c0_106] : memref<4x8x4xf32, #tpu.memory_space<vmem>>, vector<1x8x4xf32>
    %496 = vector.shape_cast %495 : vector<1x8x4xf32> to vector<8x4xf32>
    %497 = arith.addf %443, %494 : vector<4x512xf32>
    %498 = vector.extract_strided_slice %496 {offsets = [0, 0], sizes = [8, 1], strides = [1, 1]} : vector<8x4xf32> to vector<8x1xf32>
    %499 = vector.extract_strided_slice %497 {offsets = [0, 0], sizes = [1, 512], strides = [1, 1]} : vector<4x512xf32> to vector<1x512xf32>
    %500 = vector.broadcast %498 : vector<8x1xf32> to vector<8x512xf32>
    %501 = vector.broadcast %499 : vector<1x512xf32> to vector<8x512xf32>
    %502 = arith.mulf %500, %501 : vector<8x512xf32>
    %503 = vector.extract_strided_slice %496 {offsets = [0, 1], sizes = [8, 1], strides = [1, 1]} : vector<8x4xf32> to vector<8x1xf32>
    %504 = vector.extract_strided_slice %497 {offsets = [1, 0], sizes = [1, 512], strides = [1, 1]} : vector<4x512xf32> to vector<1x512xf32>
    %505 = vector.broadcast %503 : vector<8x1xf32> to vector<8x512xf32>
    %506 = vector.broadcast %504 : vector<1x512xf32> to vector<8x512xf32>
    %507 = arith.mulf %505, %506 : vector<8x512xf32>
    %508 = arith.addf %502, %507 : vector<8x512xf32>
    %509 = vector.extract_strided_slice %496 {offsets = [0, 2], sizes = [8, 1], strides = [1, 1]} : vector<8x4xf32> to vector<8x1xf32>
    %510 = vector.extract_strided_slice %497 {offsets = [2, 0], sizes = [1, 512], strides = [1, 1]} : vector<4x512xf32> to vector<1x512xf32>
    %511 = vector.broadcast %509 : vector<8x1xf32> to vector<8x512xf32>
    %512 = vector.broadcast %510 : vector<1x512xf32> to vector<8x512xf32>
    %513 = arith.mulf %511, %512 : vector<8x512xf32>
    %514 = arith.addf %508, %513 : vector<8x512xf32>
    %515 = vector.extract_strided_slice %496 {offsets = [0, 3], sizes = [8, 1], strides = [1, 1]} : vector<8x4xf32> to vector<8x1xf32>
    %516 = vector.extract_strided_slice %497 {offsets = [3, 0], sizes = [1, 512], strides = [1, 1]} : vector<4x512xf32> to vector<1x512xf32>
    %517 = vector.broadcast %515 : vector<8x1xf32> to vector<8x512xf32>
    %518 = vector.broadcast %516 : vector<1x512xf32> to vector<8x512xf32>
    %519 = arith.mulf %517, %518 : vector<8x512xf32>
    %520 = arith.addf %514, %519 : vector<8x512xf32>
    %521 = arith.addf %395, %520 : vector<8x512xf32>
    %cst_107 = arith.constant 0.000000e+00 : f32
    %522 = vector.broadcast %cst_107 : f32 to vector<8x512xf32>
    %523 = arith.maximumf %521, %522 : vector<8x512xf32>
    %c0_108 = arith.constant 0 : index
    %c0_109 = arith.constant 0 : index
    %524 = vector.load %arg10[%c0_108, %c0_109] : memref<8x512xf32, #tpu.memory_space<vmem>>, vector<8x512xf32>
    tpu.vector_store %arg10[%c0_108, %c0_109], %523 {strides = array<i32>} : memref<8x512xf32, #tpu.memory_space<vmem>>, vector<8x512xf32>,
    return
  }
  func.func @transform_0(%arg0: i32) -> (i32, i32) {
    %c0_i32 = arith.constant 0 : i32
    %c0_i32_0 = arith.constant 0 : i32
    return %c0_i32, %arg0 : i32, i32
  }
  func.func @transform_1(%arg0: i32) -> (i32, i32) {
    %c0_i32 = arith.constant 0 : i32
    %c0_i32_0 = arith.constant 0 : i32
    %c0_i32_1 = arith.constant 0 : i32
    return %c0_i32, %c0_i32_0 : i32, i32
  }
  func.func @transform_2(%arg0: i32) -> (i32, i32) {
    %c0_i32 = arith.constant 0 : i32
    %c0_i32_0 = arith.constant 0 : i32
    %c0_i32_1 = arith.constant 0 : i32
    return %c0_i32, %c0_i32_0 : i32, i32
  }
  func.func @transform_3(%arg0: i32) -> (i32, i32, i32) {
    %c0_i32 = arith.constant 0 : i32
    %c0_i32_0 = arith.constant 0 : i32
    %c0_i32_1 = arith.constant 0 : i32
    %c0_i32_2 = arith.constant 0 : i32
    return %c0_i32, %c0_i32_0, %c0_i32_1 : i32, i32, i32
  }
  func.func @transform_4(%arg0: i32) -> (i32, i32, i32) {
    %c0_i32 = arith.constant 0 : i32
    %c0_i32_0 = arith.constant 0 : i32
    %c0_i32_1 = arith.constant 0 : i32
    %c0_i32_2 = arith.constant 0 : i32
    return %c0_i32, %c0_i32_0, %c0_i32_1 : i32, i32, i32
  }
  func.func @transform_5(%arg0: i32) -> (i32, i32, i32) {
    %c0_i32 = arith.constant 0 : i32
    %c0_i32_0 = arith.constant 0 : i32
    %c0_i32_1 = arith.constant 0 : i32
    %c0_i32_2 = arith.constant 0 : i32
    return %c0_i32, %c0_i32_0, %c0_i32_1 : i32, i32, i32
  }
  func.func @transform_6(%arg0: i32) -> (i32, i32, i32) {
    %c0_i32 = arith.constant 0 : i32
    %c0_i32_0 = arith.constant 0 : i32
    %c0_i32_1 = arith.constant 0 : i32
    %c0_i32_2 = arith.constant 0 : i32
    return %c0_i32, %c0_i32_0, %c0_i32_1 : i32, i32, i32
  }
  func.func @transform_7(%arg0: i32) -> (i32, i32, i32) {
    %c0_i32 = arith.constant 0 : i32
    %c0_i32_0 = arith.constant 0 : i32
    %c0_i32_1 = arith.constant 0 : i32
    %c0_i32_2 = arith.constant 0 : i32
    return %c0_i32, %c0_i32_0, %c0_i32_1 : i32, i32, i32
  }
  func.func @transform_8(%arg0: i32) -> (i32, i32) {
    %c0_i32 = arith.constant 0 : i32
    %c0_i32_0 = arith.constant 0 : i32
    %c0_i32_1 = arith.constant 0 : i32
    return %c0_i32, %c0_i32_0 : i32, i32
  }
  func.func @transform_9(%arg0: i32) -> (i32, i32) {
    %c0_i32 = arith.constant 0 : i32
    %c0_i32_0 = arith.constant 0 : i32
    return %c0_i32, %arg0 : i32, i32
  }
}

</mosaic_0001>

<bundles_post_ra>
// kernel: tpu_custom_call.1
= control target key start
LH: loop header
LB: loop body
LE: loop exit
PB: predicated region body
PF: predicated region fallthrough
CT: control target
= control target key end

     0   :  { %v2746_v1 = vmov 0   ;;  %v2740_v2 = vmov 2   ;;  %s2730_s0 = inlined_call_operand.vmem [shape: f32[8,512], index: 0, kind: input, shape index: {}]   ;;  %s2731_s1 = inlined_call_operand.vmem [shape: f32[4,8], index: 1, kind: input, shape index: {}]   ;;  %s2732_s2 = inlined_call_operand.vmem [shape: f32[4,1], index: 2, kind: input, shape index: {}]   ;;  %s2733_s3 = inlined_call_operand.vmem [shape: f32[3,4,4], index: 3, kind: input, shape index: {}]   ;;  %s2734_s4 = inlined_call_operand.vmem [shape: f32[3,4,1], index: 4, kind: input, shape index: {}]   ;;  %s2735_s5 = inlined_call_operand.vmem [shape: f32[3,4,4], index: 5, kind: input, shape index: {}]   ;;  %s2736_s6 = inlined_call_operand.vmem [shape: f32[3,4,1], index: 6, kind: input, shape index: {}]   ;;  %s2737_s7 = inlined_call_operand.vmem [shape: f32[4,8,4], index: 7, kind: input, shape index: {}]   ;;  %s2738_s8 = inlined_call_operand.vmem [shape: f32[8,1], index: 8, kind: input, shape index: {}]   ;;  %s2739_s9 = inlined_call_operand.hbm [shape: f32[8,512], index: 9, kind: output, shape index: {}]  }
   0x1   :  { %v218_v0 = vld [vmem:[%s2731_s1] sm:$0xf]  ;;  %1600 = vset.pattern.permute.xlu0 %v2746_v1  ;;  %1602 = vset.pattern.permute.xlu1 %v2740_v2 }
   0x2   :  { %221 = vperm.xlu0 %1600, %v218_v0   ;;  %249 = vperm.xlu1 %1602, %v218_v0  }
   0x3   :  { %14 = vsyncpa [#allocation3], 0  ;;  %v1731_v3 = vmov 4   ;;  %v2744_v4 = vmov 1   ;;  %v2742_v5 = vmov 3   ;;  %v1734_v6 = vmov 5  }
   0x4   :  { %1604 = vset.pattern.permute.xlu2 %v1731_v3  ;;  %v344_v7 = vld [vmem:[%s2732_s2] sm:$0xf]  ;;  %v1735_v8 = vmov 6   ;;  %v1736_v9 = vmov 7   ;;  %v1815_v12 = vld [vmem:[%s2730_s0 + $0x8] sm:$0xff]  ;;  %v1820_v13 = vld [vmem:[%s2730_s0 + $0x10] sm:$0xff] }
   0x5   :  { %281 = vperm.xlu2 %1604, %v218_v0   ;;  %v1810_v11 = vld [vmem:[%s2730_s0] sm:$0xff]  ;;  %v1825_v14 = vld [vmem:[%s2730_s0 + $0x18] sm:$0xff]  ;;  %v225_v17 = vperm.slane %v1815_v12, 0  ;;  %v226_v18 = vperm.slane %v1820_v13, 0  ;;  %v285_v22 = vperm.slane %v1815_v12, 4  ;;  %v286_v23 = vperm.slane %v1820_v13, 4 }
   0x6   :  { %v224_v16 = vperm.slane %v1810_v11, 0  ;;  %v227_v19 = vperm.slane %v1825_v14, 0  ;;  %v284_v21 = vperm.slane %v1810_v11, 4  ;;  %v287_v24 = vperm.slane %v1825_v14, 4  ;;  %s1737_s0 = smov 127   ;;  %s1738_s19 = smov 1  }
   0x7   :  { %v252_v25 = vperm.slane %v1810_v11, 2  ;;  %v253_v26 = vperm.slane %v1815_v12, 2  ;;  %v254_v27 = vperm.slane %v1820_v13, 2  ;;  %v255_v28 = vperm.slane %v1825_v14, 2  ;;  %s1740_s22 = smov 16   ;;  %s1741_s23 = smov 112  }
   0x8   :  { %v236_v29 = vperm.slane %v1810_v11, 1  ;;  %v237_v30 = vperm.slane %v1815_v12, 1  ;;  %v238_v31 = vperm.slane %v1820_v13, 1  ;;  %v239_v32 = vperm.slane %v1825_v14, 1  ;;  %s1554_s30 = sshll.u32 %s2739_s9, 4  ;;  %s1555_s30 = int_to_ptr.hbm [resolvable:$true] %s1554_s30 }
   0x9   :  { %v268_v33 = vperm.slane %v1810_v11, 3  ;;  %v269_v34 = vperm.slane %v1815_v12, 3  ;;  %v270_v35 = vperm.slane %v1820_v13, 3  ;;  %v271_v36 = vperm.slane %v1825_v14, 3 }
   0xa   :  { %1601 = vset.pattern.permute.xlu0 %v2744_v4  ;;  %1603 = vset.pattern.permute.xlu1 %v2742_v5  ;;  %v300_v42 = vperm.slane %v1810_v11, 5  ;;  %v301_v43 = vperm.slane %v1815_v12, 5  ;;  %v302_v44 = vperm.slane %v1820_v13, 5  ;;  %v303_v45 = vperm.slane %v1825_v14, 5 }
   0xb   :  { %233 = vperm.xlu0 %1601, %v218_v0   ;;  %265 = vperm.xlu1 %1603, %v218_v0   ;;  %v316_v46 = vperm.slane %v1810_v11, 6  ;;  %v317_v47 = vperm.slane %v1815_v12, 6  ;;  %v318_v48 = vperm.slane %v1820_v13, 6  ;;  %v319_v49 = vperm.slane %v1825_v14, 6 }
   0xc   :  { %v332_v50 = vperm.slane %v1810_v11, 7  ;;  %v333_v51 = vperm.slane %v1815_v12, 7  ;;  %v334_v52 = vperm.slane %v1820_v13, 7  ;;  %v335_v53 = vperm.slane %v1825_v14, 7 }
   0xd   :  { %1605 = vset.pattern.permute.xlu2 %v1734_v6 }
   0xe   :  { %297 = vperm.xlu2 %1605, %v218_v0  }
  0x13   :  { %1606 = vset.pattern.permute.xlu1 %v1735_v8  ;;  %1608 = vset.pattern.permute.xlu0 %v2746_v1 }
  0x14   :  { %313 = vperm.xlu1 %1606, %v218_v0   ;;  %347 = vperm.xlu0 %1608, %v344_v7  }
  0x16   :  { %1607 = vset.pattern.permute.xlu2 %v1736_v9 }
  0x17   :  { %329 = vperm.xlu2 %1607, %v218_v0  }
  0x1c   :  { %1609 = vset.pattern.permute.xlu1 %v2746_v1  ;;  %1612 = vset.pattern.permute.xlu0 %v2744_v4 }
  0x1f   :  { %1610 = vset.pattern.permute.xlu2 %v2744_v4 }
  0x5f   :  { %v282_v10 = vpop.permute.xlu2 %281 }
  0x60   :  { %v288_v38 = vmul.f32 %v284_v21, %v282_v10  ;;  %v289_v39 = vmul.f32 %v285_v22, %v282_v10  ;;  %v290_v40 = vmul.f32 %v286_v23, %v282_v10  ;;  %v291_v41 = vmul.f32 %v287_v24, %v282_v10 }
  0x68   :  { %v298_v37 = vpop.permute.xlu2 %297 }
  0x69   :  { %v304_v22 = vmul.f32 %v300_v42, %v298_v37  ;;  %v305_v23 = vmul.f32 %v301_v43, %v298_v37  ;;  %v306_v24 = vmul.f32 %v302_v44, %v298_v37 }
  0x71   :  { %v330_v21 = vpop.permute.xlu2 %329 }
  0x74   :  { %v222_v15 = vpop.permute.xlu0 %221  ;;  %v250_v20 = vpop.permute.xlu1 %249 }
  0x75   :  { %v228_v54 = vmul.f32 %v224_v16, %v222_v15  ;;  %v229_v55 = vmul.f32 %v225_v17, %v222_v15  ;;  %v230_v56 = vmul.f32 %v226_v18, %v222_v15  ;;  %v231_v57 = vmul.f32 %v227_v19, %v222_v15 }
  0x76   :  { %v256_v0 = vmul.f32 %v252_v25, %v250_v20  ;;  %v257_v3 = vmul.f32 %v253_v26, %v250_v20  ;;  %v258_v6 = vmul.f32 %v254_v27, %v250_v20  ;;  %v259_v7 = vmul.f32 %v255_v28, %v250_v20 }
  0x77   :  { %v307_v25 = vmul.f32 %v303_v45, %v298_v37 }
  0x7d   :  { %v234_v58 = vpop.permute.xlu0 %233  ;;  %v266_v59 = vpop.permute.xlu1 %265 }
  0x7e   :  { %v240_v60 = vmul.f32 %v236_v29, %v234_v58  ;;  %v241_v61 = vmul.f32 %v237_v30, %v234_v58  ;;  %v242_v62 = vmul.f32 %v238_v31, %v234_v58  ;;  %v243_v63 = vmul.f32 %v239_v32, %v234_v58 }
  0x7f   :  { %v272_v12 = vmul.f32 %v268_v33, %v266_v59  ;;  %v273_v13 = vmul.f32 %v269_v34, %v266_v59  ;;  %v274_v14 = vmul.f32 %v270_v35, %v266_v59  ;;  %v275_v16 = vmul.f32 %v271_v36, %v266_v59 }
  0x80   :  { %v244_v8 = vadd.f32 %v240_v60, %v228_v54  ;;  %v245_v9 = vadd.f32 %v241_v61, %v229_v55  ;;  %v246_v10 = vadd.f32 %v242_v62, %v230_v56  ;;  %v247_v11 = vadd.f32 %v243_v63, %v231_v57 }
  0x81   :  { %v336_v29 = vmul.f32 %v332_v50, %v330_v21  ;;  %v337_v30 = vmul.f32 %v333_v51, %v330_v21  ;;  %v338_v31 = vmul.f32 %v334_v52, %v330_v21  ;;  %v339_v32 = vmul.f32 %v335_v53, %v330_v21 }
  0x82   :  { %v260_v17 = vadd.f32 %v256_v0, %v244_v8  ;;  %v261_v15 = vadd.f32 %v257_v3, %v245_v9  ;;  %v262_v18 = vadd.f32 %v258_v6, %v246_v10  ;;  %v263_v19 = vadd.f32 %v259_v7, %v247_v11 }
  0x84   :  { %v276_v26 = vadd.f32 %v272_v12, %v260_v17  ;;  %v277_v27 = vadd.f32 %v273_v13, %v261_v15  ;;  %v278_v20 = vadd.f32 %v274_v14, %v262_v18  ;;  %v279_v28 = vadd.f32 %v275_v16, %v263_v19  ;;  %v1886_v16 = vld [vmem:[%s2737_s7] sm:$0xff] }
  0x85   :  { %v37_v17 = vlaneseq }
  0x86   :  { %v292_v33 = vadd.f32 %v288_v38, %v276_v26  ;;  %v293_v34 = vadd.f32 %v289_v39, %v277_v27  ;;  %v294_v35 = vadd.f32 %v290_v40, %v278_v20  ;;  %v295_v36 = vadd.f32 %v291_v41, %v279_v28  ;;  %v314_v54 = vpop.permute.xlu1 %313  ;;  %v348_v51 = vpop.permute.xlu0 %347 }
  0x87   :  { %v320_v55 = vmul.f32 %v316_v46, %v314_v54  ;;  %v321_v56 = vmul.f32 %v317_v47, %v314_v54  ;;  %v322_v57 = vmul.f32 %v318_v48, %v314_v54  ;;  %v323_v42 = vmul.f32 %v319_v49, %v314_v54 }
  0x88   :  { %v308_v43 = vadd.f32 %v304_v22, %v292_v33  ;;  %v309_v44 = vadd.f32 %v305_v23, %v293_v34  ;;  %v310_v37 = vadd.f32 %v306_v24, %v294_v35  ;;  %v311_v45 = vadd.f32 %v307_v25, %v295_v36 }
  0x89   :  { %v1892_v18 = vand.u32 127, %v37_v17  ;;  %v1739_v33 = vmov 0.0   ;;  %v588_v17 = vld [vmem:[%s2734_s4] sm:$0xf] }
  0x8a   :  { %v324_v58 = vadd.f32 %v320_v55, %v308_v43  ;;  %v325_v59 = vadd.f32 %v321_v56, %v309_v44  ;;  %v326_v60 = vadd.f32 %v322_v57, %v310_v37  ;;  %v327_v50 = vadd.f32 %v323_v42, %v311_v45 }
  0x8b   :  { %v1895_v19 = vadd.s32 256, %v1892_v18  ;;  %v1898_v21 = vadd.s32 128, %v1892_v18  ;;  %v46_v25 = vand.u32 255, %v1892_v18  ;;  %v1906_v28 = vadd.s32 384, %v1892_v18 }
  0x8c   :  { %v340_v52 = vadd.f32 %v336_v29, %v324_v58  ;;  %v341_v53 = vadd.f32 %v337_v30, %v325_v59  ;;  %v342_v38 = vadd.f32 %v338_v31, %v326_v60  ;;  %v343_v39 = vadd.f32 %v339_v32, %v327_v50 }
  0x8d   :  { %v60_v22 = vand.u32 255, %v1895_v19  ;;  %v53_v26 = vand.u32 255, %v1898_v21  ;;  %v94_v29 = vand.u32 15, %v46_v25  ;;  %v67_v31 = vand.u32 255, %v1906_v28 }
  0x8e   :  { %v350_v40 = vadd.f32 %v348_v51, %v340_v52  ;;  %v351_v41 = vadd.f32 %v348_v51, %v341_v53  ;;  %v352_v61 = vadd.f32 %v348_v51, %v342_v38  ;;  %v353_v46 = vadd.f32 %v348_v51, %v343_v39 }
  0x8f   :  { %v108_v20 = vand.u32 15, %v60_v22  ;;  %v101_v30 = vand.u32 15, %v53_v26  ;;  %vm464_vm2 = vcmp.lt.s32.totalorder %v1892_v18, 127  ;;  %vm138_vm3 = vcmp.gt.s32.totalorder %v94_v29, 0 }
  0x90   :  { %v354_v47 = vmul.f32 0.5, %v350_v40  ;;  %v355_v48 = vmul.f32 0.5, %v351_v41  ;;  %v356_v49 = vmul.f32 0.5, %v352_v61  ;;  %v357_v62 = vmul.f32 0.5, %v353_v46 }
  0x91   :  { %vm140_vm0 = vcmp.gt.s32.totalorder %v108_v20, 0  ;;  %vm160_vm1 = vcmp.lt.s32.totalorder %v108_v20, 15  ;;  %vm139_vm4 = vcmp.gt.s32.totalorder %v101_v30, 0  ;;  %vm451_vm5 = vcmp.lt.s32.totalorder %v1892_v18, 1 }
  0x92   :  { %1647 = vtanh.f32 %v354_v47  ;;  %v1915_v34 = vsel %vm140_vm0, 1.0, %v1739_v33  ;;  %v1919_v54 = vsel %vm160_vm1, 1.0, %v1739_v33  ;;  %v115_v57 = vand.u32 15, %v67_v31 }
  0x93   :  { %1649 = vtanh.f32 %v355_v48  ;;  %v1929_v43 = vsel %vm138_vm3, 1.0, %v1739_v33  ;;  %v1932_v44 = vsel %vm139_vm4, 1.0, %v1739_v33  ;;  %vm158_vm6 = vcmp.lt.s32.totalorder %v94_v29, 15 }
  0x94   :  { %1651 = vtanh.f32 %v356_v49  ;;  %vm159_vm7 = vcmp.lt.s32.totalorder %v101_v30, 15  ;;  %vm141_vm8 = vcmp.gt.s32.totalorder %v115_v57, 0  ;;  %v1945_v52 = vsel %vm158_vm6, 1.0, %v1739_v33 }
  0x95   :  { %1653 = vtanh.f32 %v357_v62  ;;  %v1948_v53 = vsel %vm159_vm7, 1.0, %v1739_v33  ;;  %v1953_v39 = vsel %vm141_vm8, 1.0, %v1739_v33  ;;  %vm161_vm9 = vcmp.lt.s32.totalorder %v115_v57, 15 }
  0x96   :  { %vm178_vm10 = vcmp.ge.s32.totalorder %v46_v25, 16  ;;  %vm180_vm11 = vcmp.ge.s32.totalorder %v60_v22, 16  ;;  %vm493_vm12 = vcmp.lt.s32.totalorder %v1892_v18, 16  ;;  %vm506_vm13 = vcmp.lt.s32.totalorder %v1892_v18, 112 }
  0x97   :  { %v2002_v29 = vsel %vm178_vm10, 1.0, %v1739_v33  ;;  %vm199_vm14 = vcmp.lt.s32.totalorder %v53_v26, 240  ;;  %vm201_vm15 = vcmp.lt.s32.totalorder %v67_v31, 240 }
  0x98   :  { %v1648_v63 = vpop.eup %1647  ;;  %2772 = vst [vmem:[#allocation7_spill] sm:$0xff] %v2002_v29 }
  0x99   :  { %v1650_v0 = vpop.eup %1649  ;;  %v362_v3 = vmul.f32 0.5, %v1648_v63 }
  0x9a   :  { %v363_v6 = vmul.f32 0.5, %v1650_v0  ;;  %v1652_v7 = vpop.eup %1651 }
  0x9b   :  { %v1859_v8 = vadd.f32 0.5, %v362_v3  ;;  %v1654_v9 = vpop.eup %1653  ;;  %v364_v11 = vmul.f32 0.5, %v1652_v7  ;;  %v1969_v3 = vsel %vm161_vm9, 1.0, %v1739_v33 }
  0x9c   :  { %v1861_v10 = vadd.f32 0.5, %v363_v6  ;;  %v365_v12 = vmul.f32 0.5, %v1654_v9 }
  0x9d   :  { %456 = vrot.lane.b32.xlu0 %v1859_v8, %s1737_s0  ;;  %443 = vrot.lane.b32.xlu1 %v1859_v8, %s1738_s19  ;;  %v1869_v13 = vadd.f32 0.5, %v364_v11 }
  0x9e   :  { %445 = vrot.lane.b32.xlu2 %v1861_v10, %s1738_s19  ;;  %v1871_v14 = vadd.f32 0.5, %v365_v12  ;;  %v442_v12 = vld [vmem:[%s2733_s3] sm:$0xf] }
  0xa5   :  { %462 = vrot.lane.b32.xlu0 %v1871_v14, %s1737_s0  ;;  %447 = vrot.lane.b32.xlu1 %v1869_v13, %s1738_s19 }
  0xa6   :  { %449 = vrot.lane.b32.xlu2 %v1871_v14, %s1738_s19 }
  0xad   :  { %458 = vrot.lane.b32.xlu1 %v1861_v10, %s1737_s0 }
  0xae   :  { %460 = vrot.lane.b32.xlu2 %v1869_v13, %s1737_s0 }
  0xb5   :  { %373 = vperm.xlu1 %1609, %v1886_v16  }
  0xb6   :  { %385 = vperm.xlu2 %1610, %v1886_v16  }
  0xbd   :  { %1613 = vset.pattern.permute.xlu1 %v2740_v2 }
  0xbe   :  { %1611 = vset.pattern.permute.xlu2 %v2746_v1 }
  0xf8   :  { %v446_v15 = vpop.permute.xlu2 %445 }
 0x100   :  { %v450_v23 = vpop.permute.xlu2 %449 }
 0x108   :  { %v461_v32 = vpop.permute.xlu2 %460 }
 0x10f   :  { %v457_v24 = vpop.permute.xlu0 %456  ;;  %v444_v27 = vpop.permute.xlu1 %443 }
 0x110   :  { %v454_v37 = vsel %vm451_vm5, %v444_v27, %v446_v15  ;;  %v455_v45 = vsel %vm451_vm5, %v450_v23, %v444_v27 }
 0x111   :  { %v469_v60 = vmul.f32 %v1929_v43, %v455_v45  ;;  %v470_v50 = vmul.f32 %v1932_v44, %v454_v37 }
 0x113   :  { %v473_v46 = vadd.f32 %v469_v60, %v1859_v8  ;;  %v474_v47 = vadd.f32 %v470_v50, %v1861_v10 }
 0x117   :  { %v463_v35 = vpop.permute.xlu0 %462  ;;  %v448_v36 = vpop.permute.xlu1 %447 }
 0x118   :  { %v465_v55 = vsel %vm464_vm2, %v461_v32, %v463_v35  ;;  %v453_v56 = vsel %vm451_vm5, %v446_v15, %v448_v36  ;;  %v452_v40 = vsel %vm451_vm5, %v448_v36, %v450_v23  ;;  %v468_v6 = vsel %vm464_vm2, %v463_v35, %v457_v24  ;;  %v1992_v15 = vpop.permute.xlu2 %385 }
 0x119   :  { %v471_v42 = vmul.f32 %v1915_v34, %v453_v56  ;;  %v479_v58 = vmul.f32 %v1919_v54, %v465_v55  ;;  %v472_v62 = vmul.f32 %v1953_v39, %v452_v40  ;;  %v480_v9 = vmul.f32 %v1969_v3, %v468_v6  ;;  %2770 = vst [vmem:[#allocation5_spill] sm:$0xff] %v1992_v15 }
 0x11a   :  { %v2005_v36 = vsel %vm180_vm11, 1.0, %v1739_v33 }
 0x11b   :  { %v475_v59 = vadd.f32 %v471_v42, %v1869_v13  ;;  %v476_v7 = vadd.f32 %v472_v62, %v1871_v14  ;;  %2773 = vst [vmem:[#allocation8_spill] sm:$0xff] %v2005_v36 }
 0x11d   :  { %v1942_v51 = vadd.f32 %v479_v58, %v475_v59  ;;  %v484_v11 = vadd.f32 %v480_v9, %v476_v7  ;;  %v2025_v58 = vsel %vm199_vm14, 1.0, %v1739_v33  ;;  %v2028_v59 = vsel %vm201_vm15, 1.0, %v1739_v33 }
 0x11e   :  { %2774 = vst [vmem:[#allocation9_spill] sm:$0xff] %v2025_v58 }
 0x11f   :  { %489 = vrot.lane.b32.xlu2 %v1942_v51, %s1740_s22  ;;  %v459_v38 = vpop.permute.xlu1 %458  ;;  %2775 = vst [vmem:[#allocation10_spill] sm:$0xff] %v2028_v59 }
 0x120   :  { %v466_v41 = vsel %vm464_vm2, %v459_v38, %v461_v32  ;;  %v467_v61 = vsel %vm464_vm2, %v457_v24, %v459_v38 }
 0x121   :  { %v477_v48 = vmul.f32 %v1945_v52, %v467_v61  ;;  %v478_v49 = vmul.f32 %v1948_v53, %v466_v41 }
 0x123   :  { %v481_v63 = vadd.f32 %v477_v48, %v473_v46  ;;  %v482_v0 = vadd.f32 %v478_v49, %v474_v47 }
 0x125   :  { %485 = vrot.lane.b32.xlu0 %v481_v63, %s1740_s22  ;;  %487 = vrot.lane.b32.xlu1 %v482_v0, %s1740_s22 }
 0x127   :  { %500 = vrot.lane.b32.xlu2 %v482_v0, %s1741_s23  ;;  %v1994_v23 = vpop.permute.xlu1 %373 }
 0x128   :  { %2771 = vst [vmem:[#allocation6_spill] sm:$0xff] %v1994_v23 }
 0x12d   :  { %491 = vrot.lane.b32.xlu0 %v484_v11, %s1740_s22  ;;  %498 = vrot.lane.b32.xlu1 %v481_v63, %s1741_s23 }
 0x12f   :  { %529 = vperm.xlu2 %1611, %v442_v12  }
 0x135   :  { %502 = vrot.lane.b32.xlu0 %v1942_v51, %s1741_s23  ;;  %504 = vrot.lane.b32.xlu1 %v484_v11, %s1741_s23 }
 0x137   :  { %1614 = vset.pattern.permute.xlu2 %v2742_v5 }
 0x138   :  { %573 = vperm.xlu2 %1614, %v442_v12  }
 0x13d   :  { %541 = vperm.xlu0 %1612, %v442_v12   ;;  %557 = vperm.xlu1 %1613, %v442_v12  }
 0x140   :  { %1616 = vset.pattern.permute.xlu2 %v2740_v2 }
 0x141   :  { %401 = vperm.xlu2 %1616, %v1886_v16  }
 0x145   :  { %1615 = vset.pattern.permute.xlu1 %v2746_v1 }
 0x146   :  { %591 = vperm.xlu1 %1615, %v588_v17  }
 0x149   :  { %1617 = vset.pattern.permute.xlu2 %v2746_v1 }
 0x179   :  { %v490_v24 = vpop.permute.xlu2 %489 }
 0x181   :  { %v501_v35 = vpop.permute.xlu2 %500 }
 0x189   :  { %v530_v60 = vpop.permute.xlu2 %529 }
 0x197   :  { %v486_v27 = vpop.permute.xlu0 %485  ;;  %v488_v20 = vpop.permute.xlu1 %487 }
 0x198   :  { %v495_v55 = vsel %vm493_vm12, %v488_v20, %v490_v24  ;;  %v496_v57 = vsel %vm493_vm12, %v486_v27, %v488_v20 }
 0x199   :  { %v513_v22 = vmul.f32 %v2005_v36, %v495_v55  ;;  %v516_v21 = vadd.f32 %v496_v57, %v482_v0 }
 0x19b   :  { %v517_v28 = vadd.f32 %v513_v22, %v1942_v51 }
 0x19f   :  { %v492_v30 = vpop.permute.xlu0 %491  ;;  %v499_v32 = vpop.permute.xlu1 %498 }
 0x1a0   :  { %v497_v25 = vsel %vm493_vm12, %v492_v30, %v486_v27  ;;  %v509_v42 = vsel %vm506_vm13, %v499_v32, %v501_v35  ;;  %v494_v45 = vsel %vm493_vm12, %v490_v24, %v492_v30 }
 0x1a1   :  { %v511_v19 = vmul.f32 %v2002_v29, %v497_v25  ;;  %v518_v61 = vadd.f32 %v494_v45, %v484_v11 }
 0x1a3   :  { %v515_v56 = vadd.f32 %v511_v19, %v481_v63 }
 0x1a5   :  { %v523_v37 = vadd.f32 %v515_v56, %v509_v42 }
 0x1a7   :  { %v503_v26 = vpop.permute.xlu0 %502  ;;  %v505_v31 = vpop.permute.xlu1 %504  ;;  %v532_v50 = vperm.slane %v523_v37, 0  ;;  %v576_v48 = vperm.slane %v523_v37, 3  ;;  %v544_v63 = vperm.slane %v523_v37, 1  ;;  %v560_v9 = vperm.slane %v523_v37, 2 }
 0x1a8   :  { %v508_v38 = vsel %vm506_vm13, %v501_v35, %v503_v26  ;;  %v507_v40 = vsel %vm506_vm13, %v503_v26, %v505_v31  ;;  %v510_v41 = vsel %vm506_vm13, %v505_v31, %v499_v32 }
 0x1a9   :  { %v520_v33 = vmul.f32 %v2025_v58, %v508_v38  ;;  %v522_v46 = vmul.f32 %v2028_v59, %v510_v41  ;;  %v525_v47 = vadd.f32 %v517_v28, %v507_v40  ;;  %v536_v6 = vmul.f32 %v532_v50, %v530_v60  ;;  %v574_v50 = vpop.permute.xlu2 %573 }
 0x1ab   :  { %v524_v51 = vadd.f32 %v520_v33, %v516_v21  ;;  %v526_v49 = vadd.f32 %v522_v46, %v518_v61  ;;  %v534_v62 = vperm.slane %v525_v47, 0  ;;  %v578_v0 = vperm.slane %v525_v47, 3 }
 0x1ac   :  { %v546_v7 = vperm.slane %v525_v47, 1  ;;  %v562_v27 = vperm.slane %v525_v47, 2  ;;  %v580_v33 = vmul.f32 %v576_v48, %v574_v50 }
 0x1ad   :  { %v533_v12 = vperm.slane %v524_v51, 0  ;;  %v535_v17 = vperm.slane %v526_v49, 0  ;;  %v545_v24 = vperm.slane %v524_v51, 1  ;;  %v538_v20 = vmul.f32 %v534_v62, %v530_v60 }
 0x1ae   :  { %v547_v11 = vperm.slane %v526_v49, 1  ;;  %v561_v30 = vperm.slane %v524_v51, 2  ;;  %v563_v32 = vperm.slane %v526_v49, 2  ;;  %v577_v22 = vperm.slane %v524_v51, 3 }
 0x1af   :  { %v542_v35 = vpop.permute.xlu0 %541  ;;  %v537_v55 = vmul.f32 %v533_v12, %v530_v60  ;;  %v539_v25 = vmul.f32 %v535_v17, %v530_v60  ;;  %v558_v19 = vpop.permute.xlu1 %557  ;;  %v579_v56 = vperm.slane %v526_v49, 3  ;;  %v582_v47 = vmul.f32 %v578_v0, %v574_v50 }
 0x1b0   :  { %v548_v57 = vmul.f32 %v544_v63, %v542_v35  ;;  %v549_v42 = vmul.f32 %v545_v24, %v542_v35  ;;  %v550_v45 = vmul.f32 %v546_v7, %v542_v35  ;;  %v551_v21 = vmul.f32 %v547_v11, %v542_v35 }
 0x1b1   :  { %v564_v26 = vmul.f32 %v560_v9, %v558_v19  ;;  %v565_v37 = vmul.f32 %v561_v30, %v558_v19  ;;  %v566_v28 = vmul.f32 %v562_v27, %v558_v19  ;;  %v567_v31 = vmul.f32 %v563_v32, %v558_v19 }
 0x1b2   :  { %v552_v38 = vadd.f32 %v548_v57, %v536_v6  ;;  %v553_v40 = vadd.f32 %v549_v42, %v537_v55  ;;  %v554_v41 = vadd.f32 %v550_v45, %v538_v20  ;;  %v555_v61 = vadd.f32 %v551_v21, %v539_v25 }
 0x1b3   :  { %v581_v46 = vmul.f32 %v577_v22, %v574_v50  ;;  %v583_v60 = vmul.f32 %v579_v56, %v574_v50  ;;  %v2070_v50 = vpop.permute.xlu2 %401 }
 0x1b4   :  { %v568_v62 = vadd.f32 %v564_v26, %v552_v38  ;;  %v569_v51 = vadd.f32 %v565_v37, %v553_v40  ;;  %v570_v49 = vadd.f32 %v566_v28, %v554_v41  ;;  %v571_v63 = vadd.f32 %v567_v31, %v555_v61  ;;  %v432_v28 = vld [vmem:[%s2738_s8] sm:$0xff]  ;;  %2780 = vst [vmem:[#allocation15_spill] sm:$0xff] %v2070_v50 }
 0x1b5   :  { %v614_v31 = vld [vmem:[%s2735_s5] sm:$0xf] }
 0x1b6   :  { %v584_v12 = vadd.f32 %v580_v33, %v568_v62  ;;  %v585_v7 = vadd.f32 %v581_v46, %v569_v51  ;;  %v586_v17 = vadd.f32 %v582_v47, %v570_v49  ;;  %v587_v9 = vadd.f32 %v583_v60, %v571_v63 }
 0x1b8   :  { %v592_v24 = vpop.permute.xlu1 %591 }
 0x1b9   :  { %v594_v27 = vadd.f32 %v592_v24, %v584_v12  ;;  %v595_v11 = vadd.f32 %v592_v24, %v585_v7  ;;  %v596_v30 = vadd.f32 %v592_v24, %v586_v17  ;;  %v597_v6 = vadd.f32 %v592_v24, %v587_v9 }
 0x1bb   :  { %v598_v32 = vmul.f32 0.5, %v594_v27  ;;  %v599_v20 = vmul.f32 0.5, %v595_v11  ;;  %v600_v35 = vmul.f32 0.5, %v596_v30  ;;  %v601_v48 = vmul.f32 0.5, %v597_v6 }
 0x1bd   :  { %1655 = vtanh.f32 %v598_v32 }
 0x1be   :  { %1657 = vtanh.f32 %v599_v20 }
 0x1bf   :  { %1659 = vtanh.f32 %v600_v35 }
 0x1c0   :  { %1661 = vtanh.f32 %v601_v48 }
 0x1c3   :  { %v1656_v0 = vpop.eup %1655 }
 0x1c4   :  { %v1658_v55 = vpop.eup %1657  ;;  %v606_v25 = vmul.f32 0.5, %v1656_v0 }
 0x1c5   :  { %v607_v19 = vmul.f32 0.5, %v1658_v55  ;;  %v1660_v22 = vpop.eup %1659 }
 0x1c6   :  { %v2039_v56 = vadd.f32 0.5, %v606_v25  ;;  %v1662_v57 = vpop.eup %1661  ;;  %v608_v45 = vmul.f32 0.5, %v1660_v22 }
 0x1c7   :  { %v2041_v42 = vadd.f32 0.5, %v607_v19  ;;  %v609_v21 = vmul.f32 0.5, %v1662_v57 }
 0x1c8   :  { %2776 = vst [vmem:[#allocation11_spill] sm:$0xff] %v2039_v56  ;;  %627 = vrot.lane.b32.xlu0 %v2039_v56, %s1737_s0  ;;  %615 = vrot.lane.b32.xlu1 %v2039_v56, %s1738_s19  ;;  %v2049_v26 = vadd.f32 0.5, %v608_v45 }
 0x1c9   :  { %2777 = vst [vmem:[#allocation12_spill] sm:$0xff] %v2041_v42  ;;  %617 = vrot.lane.b32.xlu2 %v2041_v42, %s1738_s19  ;;  %v2051_v37 = vadd.f32 0.5, %v609_v21  ;;  %v1576_v21 = vld [vmem:[%s2733_s3 + $0x4] sm:$0xf] }
 0x1ca   :  { %2778 = vst [vmem:[#allocation13_spill] sm:$0xff] %v2049_v26 }
 0x1cb   :  { %2779 = vst [vmem:[#allocation14_spill] sm:$0xff] %v2051_v37 }
 0x1d0   :  { %633 = vrot.lane.b32.xlu0 %v2051_v37, %s1737_s0  ;;  %619 = vrot.lane.b32.xlu1 %v2049_v26, %s1738_s19 }
 0x1d1   :  { %621 = vrot.lane.b32.xlu2 %v2051_v37, %s1738_s19 }
 0x1d8   :  { %629 = vrot.lane.b32.xlu1 %v2041_v42, %s1737_s0 }
 0x1d9   :  { %631 = vrot.lane.b32.xlu2 %v2049_v26, %s1737_s0 }
 0x1e0   :  { %435 = vperm.xlu1 %1615, %v432_v28   ;;  %v1577_v28 = vld [vmem:[%s2734_s4 + $0x4] sm:$0xf] }
 0x1e8   :  { %705 = vperm.xlu1 %1615, %v614_v31  }
 0x1f0   :  { %1618 = vset.pattern.permute.xlu1 %v2740_v2 }
 0x223   :  { %v618_v38 = vpop.permute.xlu2 %617 }
 0x22b   :  { %v622_v40 = vpop.permute.xlu2 %621 }
 0x233   :  { %v632_v33 = vpop.permute.xlu2 %631 }
 0x23a   :  { %v628_v41 = vpop.permute.xlu0 %627  ;;  %v616_v61 = vpop.permute.xlu1 %615 }
 0x23b   :  { %v625_v49 = vsel %vm451_vm5, %v616_v61, %v618_v38  ;;  %v626_v63 = vsel %vm451_vm5, %v622_v40, %v616_v61 }
 0x23c   :  { %v639_v17 = vmul.f32 %v1929_v43, %v626_v63  ;;  %v640_v9 = vmul.f32 %v1932_v44, %v625_v49 }
 0x23e   :  { %v643_v32 = vadd.f32 %v639_v17, %v2039_v56  ;;  %v644_v20 = vadd.f32 %v640_v9, %v2041_v42 }
 0x242   :  { %v634_v46 = vpop.permute.xlu0 %633  ;;  %v620_v47 = vpop.permute.xlu1 %619 }
 0x243   :  { %v635_v60 = vsel %vm464_vm2, %v632_v33, %v634_v46  ;;  %v624_v62 = vsel %vm451_vm5, %v618_v38, %v620_v47  ;;  %v623_v11 = vsel %vm451_vm5, %v620_v47, %v622_v40  ;;  %v638_v19 = vsel %vm464_vm2, %v634_v46, %v628_v41  ;;  %v2125_v38 = vld [vmem:[%s2737_s7 + $0x8] sm:$0xff]  ;;  %v764_v40 = vld [vmem:[%s2736_s6] sm:$0xf] }
 0x244   :  { %v641_v51 = vmul.f32 %v1915_v34, %v624_v62  ;;  %v649_v12 = vmul.f32 %v1919_v54, %v635_v60  ;;  %v642_v0 = vmul.f32 %v1953_v39, %v623_v11  ;;  %v650_v57 = vmul.f32 %v1969_v3, %v638_v19 }
 0x246   :  { %v645_v7 = vadd.f32 %v641_v51, %v2049_v26  ;;  %v646_v22 = vadd.f32 %v642_v0, %v2051_v37 }
 0x248   :  { %v2085_v24 = vadd.f32 %v649_v12, %v645_v7  ;;  %v654_v45 = vadd.f32 %v650_v57, %v646_v22 }
 0x24a   :  { %659 = vrot.lane.b32.xlu1 %v2085_v24, %s1740_s22  ;;  %v630_v27 = vpop.permute.xlu1 %629 }
 0x24b   :  { %v636_v30 = vsel %vm464_vm2, %v630_v27, %v632_v33  ;;  %v637_v6 = vsel %vm464_vm2, %v628_v41, %v630_v27 }
 0x24c   :  { %v647_v35 = vmul.f32 %v1945_v52, %v637_v6  ;;  %v648_v48 = vmul.f32 %v1948_v53, %v636_v30 }
 0x24e   :  { %v651_v55 = vadd.f32 %v647_v35, %v643_v32  ;;  %v652_v25 = vadd.f32 %v648_v48, %v644_v20 }
 0x250   :  { %655 = vrot.lane.b32.xlu2 %v651_v55, %s1740_s22  ;;  %657 = vrot.lane.b32.xlu0 %v652_v25, %s1740_s22 }
 0x252   :  { %669 = vrot.lane.b32.xlu1 %v652_v25, %s1741_s23  ;;  %v2136_v41 = vpop.permute.xlu1 %435 }
 0x253   :  { %2781 = vst [vmem:[#allocation16_spill] sm:$0xff] %v2136_v41 }
 0x258   :  { %661 = vrot.lane.b32.xlu2 %v654_v45, %s1740_s22  ;;  %667 = vrot.lane.b32.xlu0 %v651_v55, %s1741_s23 }
 0x25a   :  { %893 = vperm.xlu1 %1618, %v1576_v21   ;;  %v2138_v46 = vpop.permute.xlu1 %705 }
 0x260   :  { %671 = vrot.lane.b32.xlu2 %v2085_v24, %s1741_s23  ;;  %673 = vrot.lane.b32.xlu0 %v654_v45, %s1741_s23 }
 0x262   :  { %1620 = vset.pattern.permute.xlu1 %v2746_v1 }
 0x263   :  { %928 = vperm.xlu1 %1620, %v1577_v28  }
 0x268   :  { %865 = vperm.xlu2 %1617, %v1576_v21   ;;  %877 = vperm.xlu0 %1612, %v1576_v21  }
 0x26b   :  { %1623 = vset.pattern.permute.xlu1 %v2742_v5 }
 0x26c   :  { %749 = vperm.xlu1 %1623, %v614_v31  }
 0x270   :  { %1619 = vset.pattern.permute.xlu2 %v2742_v5  ;;  %1622 = vset.pattern.permute.xlu0 %v2740_v2 }
 0x271   :  { %909 = vperm.xlu2 %1619, %v1576_v21   ;;  %733 = vperm.xlu0 %1622, %v614_v31  }
 0x274   :  { %1625 = vset.pattern.permute.xlu1 %v2746_v1 }
 0x275   :  { %798 = vperm.xlu1 %1625, %v2125_v38  }
 0x279   :  { %1621 = vset.pattern.permute.xlu2 %v2744_v4 }
 0x27a   :  { %717 = vperm.xlu2 %1621, %v614_v31  }
 0x27d   :  { %1626 = vset.pattern.permute.xlu1 %v2744_v4 }
 0x282   :  { %1624 = vset.pattern.permute.xlu2 %v2746_v1 }
 0x283   :  { %767 = vperm.xlu2 %1624, %v764_v40  }
 0x28b   :  { %1627 = vset.pattern.permute.xlu2 %v2740_v2 }
 0x2aa   :  { %v656_v61 = vpop.permute.xlu2 %655 }
 0x2b2   :  { %v662_v33 = vpop.permute.xlu2 %661 }
 0x2b3   :  { %v666_v51 = vsel %vm493_vm12, %v662_v33, %v656_v61 }
 0x2b4   :  { %v679_v7 = vmul.f32 %v2002_v29, %v666_v51 }
 0x2b6   :  { %v683_v6 = vadd.f32 %v679_v7, %v651_v55 }
 0x2ba   :  { %v672_v47 = vpop.permute.xlu2 %671 }
 0x2bc   :  { %v660_v60 = vpop.permute.xlu1 %659 }
 0x2bd   :  { %v663_v0 = vsel %vm493_vm12, %v660_v60, %v662_v33 }
 0x2c2   :  { %v658_v31 = vpop.permute.xlu0 %657  ;;  %v2140_v62 = vpop.permute.xlu2 %865 }
 0x2c3   :  { %v665_v49 = vsel %vm493_vm12, %v656_v61, %v658_v31  ;;  %v664_v27 = vsel %vm493_vm12, %v658_v31, %v660_v60  ;;  %v686_v31 = vadd.f32 %v663_v0, %v654_v45 }
 0x2c4   :  { %v670_v63 = vpop.permute.xlu1 %669  ;;  %v684_v17 = vadd.f32 %v665_v49, %v652_v25  ;;  %v681_v20 = vmul.f32 %v2005_v36, %v664_v27 }
 0x2c5   :  { %v676_v12 = vsel %vm506_vm13, %v670_v63, %v672_v47 }
 0x2c6   :  { %v688_v9 = vmul.f32 %v2025_v58, %v676_v12  ;;  %v685_v33 = vadd.f32 %v681_v20, %v2085_v24 }
 0x2c8   :  { %v2152_v11 = vadd.f32 %v688_v9, %v684_v17 }
 0x2ca   :  { %v696_v30 = vmul.f32 0.11111111, %v2152_v11  ;;  %v668_v32 = vpop.permute.xlu0 %667  ;;  %v913_v19 = vperm.slane %v2152_v11, 3  ;;  %v897_v57 = vperm.slane %v2152_v11, 2  ;;  %v869_v21 = vperm.slane %v2152_v11, 0 }
 0x2cb   :  { %v677_v35 = vsel %vm506_vm13, %v668_v32, %v670_v63  ;;  %v2158_v48 = vpop.permute.xlu2 %909  ;;  %v881_v7 = vperm.slane %v2152_v11, 1 }
 0x2cc   :  { %v691_v25 = vadd.f32 %v683_v6, %v677_v35  ;;  %v2164_v22 = vsub.f32 %v2041_v42, %v696_v30  ;;  %v2167_v55 = vpop.permute.xlu1 %893  ;;  %v2173_v49 = vmul.f32 %v913_v19, %v2158_v48  ;;  %v873_v45 = vmul.f32 %v869_v21, %v2140_v62 }
 0x2cd   :  { %v901_v17 = vmul.f32 %v897_v57, %v2167_v55 }
 0x2ce   :  { %v695_v28 = vmul.f32 0.11111111, %v691_v25  ;;  %v912_v40 = vperm.slane %v691_v25, 3  ;;  %v709_v61 = vperm.slane %v2164_v22, 0  ;;  %v896_v51 = vperm.slane %v691_v25, 2 }
 0x2cf   :  { %v868_v60 = vperm.slane %v691_v25, 0  ;;  %v721_v9 = vperm.slane %v2164_v22, 1  ;;  %v880_v27 = vperm.slane %v691_v25, 1 }
 0x2d0   :  { %v2176_v63 = vsub.f32 %v2039_v56, %v695_v28  ;;  %v713_v12 = vmul.f32 %v709_v61, %v2138_v46  ;;  %v2184_v24 = vmul.f32 %v912_v40, %v2158_v48  ;;  %v900_v0 = vmul.f32 %v896_v51, %v2167_v55 }
 0x2d1   :  { %v872_v25 = vmul.f32 %v868_v60, %v2140_v62 }
 0x2d2   :  { %v674_v30 = vpop.permute.xlu0 %673  ;;  %v708_v6 = vperm.slane %v2176_v63, 0  ;;  %v720_v20 = vperm.slane %v2176_v63, 1  ;;  %v752_v51 = vperm.slane %v2176_v63, 3 }
 0x2d3   :  { %v675_v11 = vsel %vm506_vm13, %v672_v47, %v674_v30  ;;  %v678_v19 = vsel %vm506_vm13, %v674_v30, %v668_v32 }
 0x2d4   :  { %v690_v57 = vmul.f32 %v2028_v59, %v678_v19  ;;  %v693_v21 = vadd.f32 %v685_v33, %v675_v11  ;;  %v718_v28 = vpop.permute.xlu2 %717  ;;  %v712_v40 = vmul.f32 %v708_v6, %v2138_v46 }
 0x2d5   :  { %v724_v2 = vmul.f32 %v720_v20, %v718_v28  ;;  %v725_v5 = vmul.f32 %v721_v9, %v718_v28  ;;  %v929_v4 = vpop.permute.xlu1 %928 }
 0x2d6   :  { %v694_v1 = vadd.f32 %v690_v57, %v686_v31  ;;  %v697_v35 = vmul.f32 0.11111111, %v693_v21  ;;  %v914_v32 = vperm.slane %v693_v21, 3  ;;  %v870_v30 = vperm.slane %v693_v21, 0 }
 0x2d7   :  { %v2200_v60 = vadd.f32 %v724_v2, %v712_v40  ;;  %v2202_v19 = vadd.f32 %v725_v5, %v713_v12  ;;  %v882_v33 = vperm.slane %v693_v21, 1  ;;  %v898_v11 = vperm.slane %v693_v21, 2 }
 0x2d8   :  { %v698_v6 = vmul.f32 0.11111111, %v694_v1  ;;  %v701_v61 = vsub.f32 %v2049_v26, %v697_v35  ;;  %v871_v20 = vperm.slane %v694_v1, 0  ;;  %v874_v9 = vmul.f32 %v870_v30, %v2140_v62 }
 0x2d9   :  { %v883_v41 = vperm.slane %v694_v1, 1  ;;  %v899_v58 = vperm.slane %v694_v1, 2  ;;  %v902_v47 = vmul.f32 %v898_v11, %v2167_v55  ;;  %v915_v31 = vperm.slane %v694_v1, 3 }
 0x2da   :  { %v702_v57 = vsub.f32 %v2051_v37, %v698_v6  ;;  %v710_v59 = vperm.slane %v701_v61, 0  ;;  %v722_v2 = vperm.slane %v701_v61, 1  ;;  %v878_v40 = vpop.permute.xlu0 %877  ;;  %v875_v5 = vmul.f32 %v871_v20, %v2140_v62 }
 0x2db   :  { %v884_v12 = vmul.f32 %v880_v27, %v878_v40  ;;  %v885_v21 = vmul.f32 %v881_v7, %v878_v40  ;;  %v886_v29 = vmul.f32 %v882_v33, %v878_v40  ;;  %v887_v36 = vmul.f32 %v883_v41, %v878_v40 }
 0x2dc   :  { %v711_v35 = vperm.slane %v702_v57, 0  ;;  %v714_v26 = vmul.f32 %v710_v59, %v2138_v46  ;;  %v723_v30 = vperm.slane %v702_v57, 1  ;;  %v726_v42 = vmul.f32 %v722_v2, %v718_v28 }
 0x2dd   :  { %v888_v50 = vadd.f32 %v884_v12, %v872_v25  ;;  %v889_v56 = vadd.f32 %v885_v21, %v873_v45  ;;  %v890_v11 = vadd.f32 %v886_v29, %v874_v9  ;;  %v891_v1 = vadd.f32 %v887_v36, %v875_v5 }
 0x2de   :  { %v715_v6 = vmul.f32 %v711_v35, %v2138_v46  ;;  %v727_v37 = vmul.f32 %v723_v30, %v718_v28  ;;  %v730_v23 = vadd.f32 %v726_v42, %v714_v26  ;;  %v903_v15 = vmul.f32 %v899_v58, %v2167_v55  ;;  %v750_v33 = vpop.permute.xlu1 %749 }
 0x2df   :  { %v904_v62 = vadd.f32 %v900_v0, %v888_v50  ;;  %v905_v27 = vadd.f32 %v901_v17, %v889_v56  ;;  %v906_v7 = vadd.f32 %v902_v47, %v890_v11  ;;  %v918_v41 = vmul.f32 %v914_v32, %v2158_v48 }
 0x2e0   :  { %v731_v20 = vadd.f32 %v727_v37, %v715_v6  ;;  %v907_v59 = vadd.f32 %v903_v15, %v891_v1  ;;  %v919_v2 = vmul.f32 %v915_v31, %v2158_v48  ;;  %v754_v25 = vperm.slane %v701_v61, 3 }
 0x2e1   :  { %v920_v29 = vadd.f32 %v2184_v24, %v904_v62  ;;  %v921_v36 = vadd.f32 %v2173_v49, %v905_v27  ;;  %v922_v46 = vadd.f32 %v918_v41, %v906_v7  ;;  %v755_v45 = vperm.slane %v702_v57, 3 }
 0x2e2   :  { %v923_v42 = vadd.f32 %v919_v2, %v907_v59  ;;  %v756_v26 = vmul.f32 %v752_v51, %v750_v33  ;;  %v2782_v58 = vperm.slane %v2164_v22, 3  ;;  %v758_v50 = vmul.f32 %v754_v25, %v750_v33 }
 0x2e3   :  { %v931_v55 = vadd.f32 %v929_v4, %v920_v29  ;;  %v932_v17 = vadd.f32 %v929_v4, %v921_v36  ;;  %v933_v0 = vadd.f32 %v929_v4, %v922_v46  ;;  %v759_v37 = vmul.f32 %v755_v45, %v750_v33  ;;  %v734_v15 = vpop.permute.xlu0 %733  ;;  %v2260_v29 = vpop.permute.xlu2 %767 }
 0x2e4   :  { %v757_v56 = vmul.f32 %v2782_v58, %v750_v33  ;;  %v934_v28 = vadd.f32 %v929_v4, %v923_v42  ;;  %v738_v48 = vperm.slane %v701_v61, 2  ;;  %v739_v47 = vperm.slane %v702_v57, 2 }
 0x2e5   :  { %v2783_v24 = vperm.slane %v2176_v63, 2  ;;  %v936_v49 = vmul.f32 0.5, %v932_v17  ;;  %v937_v9 = vmul.f32 0.5, %v933_v0  ;;  %v2784_v31 = vperm.slane %v2164_v22, 2 }
 0x2e6   :  { %v938_v40 = vmul.f32 0.5, %v934_v28  ;;  %v742_v5 = vmul.f32 %v738_v48, %v734_v15  ;;  %v743_v12 = vmul.f32 %v739_v47, %v734_v15  ;;  %v935_v35 = vmul.f32 0.5, %v931_v55 }
 0x2e7   :  { %v740_v32 = vmul.f32 %v2783_v24, %v734_v15  ;;  %v741_v51 = vmul.f32 %v2784_v31, %v734_v15  ;;  %1663 = vtanh.f32 %v937_v9  ;;  %v2788_v2 = vmov 0   ;;  %v2262_v46 = vpop.permute.xlu1 %798 }
 0x2e8   :  { %v746_v4 = vadd.f32 %v742_v5, %v730_v23  ;;  %v747_v61 = vadd.f32 %v743_v12, %v731_v20  ;;  %1665 = vtanh.f32 %v938_v40  ;;  %v2789_v25 = vmov 1  }
 0x2e9   :  { %v744_v21 = vadd.f32 %v740_v32, %v2200_v60  ;;  %v745_v30 = vadd.f32 %v741_v51, %v2202_v19  ;;  %1667 = vtanh.f32 %v936_v49 }
 0x2ea   :  { %v2228_v11 = vadd.f32 %v758_v50, %v746_v4  ;;  %v2230_v22 = vadd.f32 %v759_v37, %v747_v61  ;;  %1669 = vtanh.f32 %v935_v35 }
 0x2eb   :  { %v2224_v57 = vadd.f32 %v756_v26, %v744_v21  ;;  %v2226_v63 = vadd.f32 %v757_v56, %v745_v30 }
 0x2ed   :  { %v1664_v1 = vpop.eup %1663 }
 0x2ee   :  { %v1666_v6 = vpop.eup %1665  ;;  %v945_v60 = vmul.f32 0.5, %v1664_v1 }
 0x2ef   :  { %v1668_v62 = vpop.eup %1667  ;;  %v946_v27 = vmul.f32 0.5, %v1666_v6 }
 0x2f0   :  { %v2232_v19 = vadd.f32 0.5, %v945_v60  ;;  %v944_v23 = vmul.f32 0.5, %v1668_v62  ;;  %v1670_v41 = vpop.eup %1669  ;;  %v1581_v62 = vld [vmem:[%s2733_s3 + $0x8] sm:$0xf] }
 0x2f1   :  { %v2234_v7 = vadd.f32 0.5, %v946_v27  ;;  %v943_v20 = vmul.f32 0.5, %v1670_v41  ;;  %v2790_v27 = vmov 3   ;;  %v2330_v41 = vld [vmem:[%s2735_s5 + $0x4] sm:$0xf] }
 0x2f2   :  { %2785 = vst [vmem:[#allocation17_spill] sm:$0xff] %v2232_v19  ;;  %957 = vrot.lane.b32.xlu1 %v2232_v19, %s1738_s19  ;;  %v2238_v33 = vadd.f32 0.5, %v944_v23  ;;  %v1582_v23 = vld [vmem:[%s2734_s4 + $0x8] sm:$0xf] }
 0x2f3   :  { %2786 = vst [vmem:[#allocation18_spill] sm:$0xff] %v2234_v7  ;;  %959 = vrot.lane.b32.xlu2 %v2234_v7, %s1738_s19  ;;  %v2244_v59 = vadd.f32 0.5, %v943_v20  ;;  %v772_v20 = vadd.f32 %v2260_v29, %v2228_v11 }
 0x2f4   :  { %2787 = vst [vmem:[#allocation19_spill] sm:$0xff] %v2238_v33  ;;  %955 = vrot.lane.b32.xlu0 %v2238_v33, %s1738_s19 }
 0x2fa   :  { %967 = vrot.lane.b32.xlu1 %v2238_v33, %s1737_s0 }
 0x2fb   :  { %953 = vrot.lane.b32.xlu2 %v2244_v59, %s1738_s19 }
 0x2fc   :  { %965 = vrot.lane.b32.xlu0 %v2244_v59, %s1737_s0 }
 0x302   :  { %810 = vperm.xlu1 %1626, %v2125_v38  }
 0x303   :  { %969 = vrot.lane.b32.xlu2 %v2232_v19, %s1737_s0 }
 0x304   :  { %971 = vrot.lane.b32.xlu0 %v2234_v7, %s1737_s0 }
 0x30a   :  { %1628 = vset.pattern.permute.xlu1 %v2788_v2 }
 0x30b   :  { %826 = vperm.xlu2 %1627, %v2125_v38  }
 0x313   :  { %1629 = vset.pattern.permute.xlu2 %v2789_v25 }
 0x34d   :  { %v960_v36 = vpop.permute.xlu2 %959 }
 0x355   :  { %v954_v45 = vpop.permute.xlu2 %953 }
 0x356   :  { %v964_v56 = vsel %vm451_vm5, %v960_v36, %v954_v45 }
 0x357   :  { %v977_v55 = vmul.f32 %v1929_v43, %v964_v56 }
 0x359   :  { %v981_v24 = vadd.f32 %v977_v55, %v2244_v59 }
 0x35d   :  { %v970_v17 = vpop.permute.xlu2 %969 }
 0x364   :  { %v958_v42 = vpop.permute.xlu1 %957 }
 0x365   :  { %v961_v9 = vsel %vm451_vm5, %v958_v42, %v960_v36  ;;  %v2345_v56 = vpop.permute.xlu2 %826 }
 0x366   :  { %v956_v26 = vpop.permute.xlu0 %955  ;;  %v980_v5 = vmul.f32 %v1953_v39, %v961_v9 }
 0x367   :  { %v963_v58 = vsel %vm451_vm5, %v954_v45, %v956_v26  ;;  %v962_v31 = vsel %vm451_vm5, %v956_v26, %v958_v42  ;;  %v773_v45 = vadd.f32 %v2260_v29, %v2230_v22  ;;  %v776_v26 = vmul.f32 0.5, %v772_v20 }
 0x368   :  { %v978_v50 = vmul.f32 %v1932_v44, %v963_v58  ;;  %v979_v40 = vmul.f32 %v1915_v34, %v962_v31  ;;  %v984_v4 = vadd.f32 %v980_v5, %v2234_v7  ;;  %v388_v22 = vperm.slane %v1859_v8, 1 }
 0x369   :  { %v777_v58 = vmul.f32 0.5, %v773_v45  ;;  %v406_v5 = vperm.slane %v1869_v13, 2 }
 0x36a   :  { %v982_v15 = vadd.f32 %v978_v50, %v2238_v33  ;;  %v983_v30 = vadd.f32 %v979_v40, %v2232_v19  ;;  %v391_v40 = vperm.slane %v1871_v14, 1 }
 0x36c   :  { %v968_v0 = vpop.permute.xlu1 %967 }
 0x36d   :  { %v974_v37 = vsel %vm464_vm2, %v968_v0, %v970_v17 }
 0x36e   :  { %v966_v28 = vpop.permute.xlu0 %965  ;;  %v986_v48 = vmul.f32 %v1948_v53, %v974_v37 }
 0x36f   :  { %v975_v47 = vsel %vm464_vm2, %v966_v28, %v968_v0 }
 0x370   :  { %v985_v32 = vmul.f32 %v1945_v52, %v975_v47  ;;  %v2278_v49 = vadd.f32 %v986_v48, %v982_v15  ;;  %v389_v15 = vperm.slane %v1861_v10, 1  ;;  %v405_v48 = vperm.slane %v1861_v10, 2 }
 0x371   :  { %v404_v47 = vperm.slane %v1859_v8, 2 }
 0x372   :  { %v2284_v51 = vadd.f32 %v985_v32, %v981_v24  ;;  %995 = vrot.lane.b32.xlu2 %v2278_v49, %s1740_s22  ;;  %v390_v24 = vperm.slane %v1869_v13, 1  ;;  %v378_v32 = vperm.slane %v1869_v13, 0 }
 0x374   :  { %1005 = vrot.lane.b32.xlu0 %v2284_v51, %s1741_s23  ;;  %993 = vrot.lane.b32.xlu1 %v2284_v51, %s1740_s22  ;;  %v2347_v50 = vpop.permute.xlu1 %810 }
 0x376   :  { %v972_v12 = vpop.permute.xlu0 %971 }
 0x377   :  { %v973_v21 = vsel %vm464_vm2, %v970_v17, %v972_v12  ;;  %v976_v35 = vsel %vm464_vm2, %v972_v12, %v966_v28  ;;  %v377_v28 = vperm.slane %v1861_v10, 0 }
 0x378   :  { %v987_v61 = vmul.f32 %v1919_v54, %v973_v21  ;;  %v988_v1 = vmul.f32 %v1969_v3, %v976_v35  ;;  %v2791_v35 = vld [vmem:[#allocation5_spill] sm:$0xff] }
 0x37a   :  { %v2302_v6 = vadd.f32 %v988_v1, %v984_v4  ;;  %v2304_v60 = vadd.f32 %v987_v61, %v983_v30  ;;  %v392_v30 = vmul.f32 %v388_v22, %v2791_v35  ;;  %v379_v4 = vperm.slane %v1871_v14, 0 }
 0x37b   :  { %v407_v61 = vperm.slane %v1871_v14, 2 }
 0x37c   :  { %1011 = vrot.lane.b32.xlu0 %v2302_v6, %s1741_s23  ;;  %997 = vrot.lane.b32.xlu1 %v2304_v60, %s1740_s22 }
 0x37d   :  { %999 = vrot.lane.b32.xlu2 %v2302_v6, %s1740_s22 }
 0x384   :  { %1232 = vperm.xlu0 %1622, %v1581_v62   ;;  %1007 = vrot.lane.b32.xlu1 %v2278_v49, %s1741_s23 }
 0x385   :  { %1009 = vrot.lane.b32.xlu2 %v2304_v60, %s1741_s23 }
 0x38c   :  { %1630 = vset.pattern.permute.xlu0 %v2790_v27  ;;  %1204 = vperm.xlu1 %1628, %v1581_v62  }
 0x38d   :  { %417 = vperm.xlu0 %1630, %v1886_v16   ;;  %1216 = vperm.xlu2 %1629, %v1581_v62   ;;  %v770_v16 = vadd.f32 %v2260_v29, %v2224_v57 }
 0x38f   :  { %v774_v36 = vmul.f32 0.5, %v770_v16  ;;  %v393_v16 = vmul.f32 %v389_v15, %v2791_v35 }
 0x391   :  { %1671 = vtanh.f32 %v774_v36 }
 0x394   :  { %1631 = vset.pattern.permute.xlu1 %v2790_v27 }
 0x395   :  { %842 = vperm.xlu0 %1630, %v2125_v38   ;;  %1248 = vperm.xlu1 %1631, %v1581_v62   ;;  %v771_v38 = vadd.f32 %v2260_v29, %v2226_v63  ;;  %v376_v29 = vperm.slane %v1859_v8, 0 }
 0x396   :  { %1632 = vset.pattern.permute.xlu2 %v2788_v2 }
 0x397   :  { %1267 = vperm.xlu2 %1632, %v1582_v23   ;;  %v775_v42 = vmul.f32 0.5, %v771_v38  ;;  %v1672_v57 = vpop.eup %1671  ;;  %v2792_v38 = vld [vmem:[#allocation6_spill] sm:$0xff] }
 0x398   :  { %v782_v55 = vmul.f32 0.5, %v1672_v57  ;;  %v380_v20 = vmul.f32 %v376_v29, %v2792_v38  ;;  %v381_v36 = vmul.f32 %v377_v28, %v2792_v38  ;;  %v382_v45 = vmul.f32 %v378_v32, %v2792_v38  ;;  %v2793_v57 = vld [vmem:[#allocation11_spill] sm:$0xff]  ;;  %v2795_v28 = vld [vmem:[#allocation12_spill] sm:$0xff] }
 0x399   :  { %1673 = vtanh.f32 %v775_v42  ;;  %v394_v42 = vmul.f32 %v390_v24, %v2791_v35  ;;  %v395_v29 = vmul.f32 %v391_v40, %v2791_v35 }
 0x39a   :  { %1675 = vtanh.f32 %v776_v26  ;;  %v786_v31 = vadd.f32 0.5, %v782_v55  ;;  %v383_v26 = vmul.f32 %v379_v4, %v2792_v38  ;;  %v2794_v55 = vld [vmem:[#allocation15_spill] sm:$0xff]  ;;  %v396_v4 = vadd.f32 %v392_v30, %v380_v20 }
 0x39b   :  { %1677 = vtanh.f32 %v777_v58  ;;  %v410_v22 = vmul.f32 %v406_v5, %v2794_v55  ;;  %v411_v15 = vmul.f32 %v407_v61, %v2794_v55  ;;  %v398_v38 = vadd.f32 %v394_v42, %v382_v45 }
 0x39d   :  { %1633 = vset.pattern.permute.xlu1 %v2788_v2  ;;  %v2397_v61 = vadd.f32 %v410_v22, %v398_v38 }
 0x39e   :  { %1043 = vperm.xlu1 %1633, %v2330_v41  }
 0x39f   :  { %1634 = vset.pattern.permute.xlu2 %v2789_v25  ;;  %v1674_v63 = vpop.eup %1673 }
 0x3a0   :  { %1055 = vperm.xlu2 %1634, %v2330_v41   ;;  %v1676_v11 = vpop.eup %1675  ;;  %v783_v37 = vmul.f32 0.5, %v1674_v63  ;;  %v2376_v63 = vadd.f32 %v786_v31, %v2793_v57  ;;  %v397_v31 = vadd.f32 %v393_v16, %v381_v36  ;;  %v399_v57 = vadd.f32 %v395_v29, %v383_v26 }
 0x3a1   :  { %v1678_v0 = vpop.eup %1677  ;;  %v784_v9 = vmul.f32 0.5, %v1676_v11  ;;  %v408_v11 = vmul.f32 %v404_v47, %v2794_v55 }
 0x3a2   :  { %v785_v12 = vmul.f32 0.5, %v1678_v0  ;;  %v787_v1 = vadd.f32 0.5, %v783_v37  ;;  %v409_v0 = vmul.f32 %v405_v48, %v2794_v55  ;;  %v2796_v48 = vld [vmem:[#allocation13_spill] sm:$0xff]  ;;  %v801_v5 = vperm.slane %v2376_v63, 0 }
 0x3a3   :  { %v788_v58 = vadd.f32 0.5, %v784_v9  ;;  %v2402_v16 = vadd.f32 %v411_v15, %v399_v57  ;;  %v829_v36 = vperm.slane %v2376_v63, 2  ;;  %v813_v45 = vperm.slane %v2376_v63, 1  ;;  %v2798_v15 = vld [vmem:[#allocation8_spill] sm:$0xff] }
 0x3a4   :  { %v789_v37 = vadd.f32 0.5, %v785_v12  ;;  %v2384_v32 = vadd.f32 %v787_v1, %v2795_v28  ;;  %v2393_v12 = vadd.f32 %v408_v11, %v396_v4  ;;  %v2395_v35 = vadd.f32 %v409_v0, %v397_v31  ;;  %v2797_v1 = vld [vmem:[#allocation14_spill] sm:$0xff] }
 0x3a5   :  { %v2389_v21 = vadd.f32 %v788_v58, %v2796_v48  ;;  %v817_v48 = vmul.f32 %v813_v45, %v2347_v50  ;;  %v2800_v45 = vld [vmem:[#allocation10_spill] sm:$0xff] }
 0x3a6   :  { %v2400_v30 = vadd.f32 %v789_v37, %v2797_v1  ;;  %v802_v20 = vperm.slane %v2384_v32, 0  ;;  %v830_v58 = vperm.slane %v2384_v32, 2  ;;  %v814_v55 = vperm.slane %v2384_v32, 1 }
 0x3a7   :  { %v803_v22 = vperm.slane %v2389_v21, 0  ;;  %v805_v37 = vmul.f32 %v801_v5, %v2262_v46  ;;  %v815_v29 = vperm.slane %v2389_v21, 1  ;;  %v2799_v5 = vld [vmem:[#allocation7_spill] sm:$0xff]  ;;  %v831_v40 = vperm.slane %v2389_v21, 2 }
 0x3a8   :  { %1636 = vset.pattern.permute.xlu2 %v2788_v2  ;;  %v804_v4 = vperm.slane %v2400_v30, 0  ;;  %v816_v31 = vperm.slane %v2400_v30, 1  ;;  %v818_v1 = vmul.f32 %v814_v55, %v2347_v50 }
 0x3a9   :  { %v807_v19 = vmul.f32 %v803_v22, %v2262_v46  ;;  %v821_v22 = vadd.f32 %v817_v48, %v805_v37  ;;  %v2801_v37 = vld [vmem:[#allocation9_spill] sm:$0xff] }
 0x3aa   :  { %v820_v7 = vmul.f32 %v816_v31, %v2347_v50 }
 0x3cc   :  { %v2349_v17 = vpop.permute.xlu2 %995 }
 0x3d7   :  { %v1000_v24 = vpop.permute.xlu2 %999 }
 0x3e6   :  { %v2365_v62 = vpop.permute.xlu0 %1005  ;;  %v2367_v23 = vpop.permute.xlu1 %993 }
 0x3e7   :  { %v1004_v11 = vsel %vm493_vm12, %v1000_v24, %v2367_v23 }
 0x3e8   :  { %v1017_v47 = vmul.f32 %v2799_v5, %v1004_v11  ;;  %v808_v11 = vmul.f32 %v804_v4, %v2262_v46 }
 0x3ee   :  { %v1012_v42 = vpop.permute.xlu0 %1011  ;;  %v998_v26 = vpop.permute.xlu1 %997 }
 0x3ef   :  { %v1002_v0 = vsel %vm493_vm12, %v2349_v17, %v998_v26  ;;  %v1016_v38 = vsel %vm506_vm13, %v1012_v42, %v2365_v62  ;;  %v1001_v57 = vsel %vm493_vm12, %v998_v26, %v1000_v24  ;;  %v832_v24 = vperm.slane %v2400_v30, 2  ;;  %v1010_v26 = vpop.permute.xlu2 %1009 }
 0x3f0   :  { %v1019_v28 = vmul.f32 %v2798_v15, %v1002_v0  ;;  %v806_v0 = vmul.f32 %v802_v20, %v2262_v46  ;;  %v819_v15 = vmul.f32 %v815_v29, %v2347_v50  ;;  %v1028_v33 = vmul.f32 %v2800_v45, %v1016_v38 }
 0x3f1   :  { %v1024_v55 = vadd.f32 %v1001_v57, %v2302_v6  ;;  %v1013_v20 = vsel %vm506_vm13, %v1010_v26, %v1012_v42  ;;  %v1021_v38 = vadd.f32 %v1017_v47, %v2284_v51  ;;  %v824_v46 = vadd.f32 %v820_v7, %v808_v11 }
 0x3f2   :  { %v1023_v9 = vadd.f32 %v1019_v28, %v2304_v60  ;;  %v1003_v60 = vsel %vm493_vm12, %v2367_v23, %v2349_v17  ;;  %v822_v29 = vadd.f32 %v818_v1, %v806_v0  ;;  %v823_v57 = vadd.f32 %v819_v15, %v807_v19 }
 0x3f3   :  { %v1022_v23 = vadd.f32 %v1003_v60, %v2278_v49  ;;  %v2455_v42 = vadd.f32 %v1028_v33, %v1024_v55  ;;  %v833_v51 = vmul.f32 %v829_v36, %v2345_v56  ;;  %v834_v19 = vmul.f32 %v830_v58, %v2345_v56 }
 0x3f4   :  { %v2446_v28 = vadd.f32 %v1023_v9, %v1013_v20  ;;  %v835_v15 = vmul.f32 %v831_v40, %v2345_v56  ;;  %v848_v0 = vperm.slane %v2400_v30, 3  ;;  %v2803_v50 = vperm.slane %v1861_v10, 3 }
 0x3f5   :  { %v2473_v36 = vadd.f32 %v834_v19, %v822_v29  ;;  %v1222_v55 = vperm.slane %v2455_v42, 1 }
 0x3f6   :  { %v1233_v31 = vpop.permute.xlu0 %1232  ;;  %v1008_v6 = vpop.permute.xlu1 %1007  ;;  %v1221_v33 = vperm.slane %v2446_v28, 1  ;;  %v839_v11 = vadd.f32 %v835_v15, %v823_v57  ;;  %v1209_v20 = vperm.slane %v2446_v28, 0  ;;  %v1237_v30 = vperm.slane %v2446_v28, 2 }
 0x3f7   :  { %v1014_v4 = vsel %vm506_vm13, %v1008_v6, %v1010_v26  ;;  %v1015_v17 = vsel %vm506_vm13, %v2365_v62, %v1008_v6  ;;  %v836_v62 = vmul.f32 %v832_v24, %v2345_v56  ;;  %v2471_v26 = vadd.f32 %v833_v51, %v821_v22  ;;  %v1217_v60 = vpop.permute.xlu2 %1216 }
 0x3f8   :  { %v1026_v9 = vmul.f32 %v2801_v37, %v1014_v4  ;;  %v2458_v48 = vadd.f32 %v1021_v38, %v1015_v17  ;;  %v1238_v56 = vperm.slane %v2455_v42, 2  ;;  %v1210_v22 = vperm.slane %v2455_v42, 0 }
 0x3f9   :  { %v840_v40 = vadd.f32 %v836_v62, %v824_v46  ;;  %v1225_v6 = vmul.f32 %v1221_v33, %v1217_v60  ;;  %v1226_v51 = vmul.f32 %v1222_v55, %v1217_v60  ;;  %v2802_v15 = vperm.slane %v1859_v8, 3 }
 0x3fa   :  { %v2466_v1 = vadd.f32 %v1026_v9, %v1022_v23  ;;  %v1219_v49 = vperm.slane %v2458_v48, 1  ;;  %v1207_v24 = vperm.slane %v2458_v48, 0  ;;  %v1235_v47 = vperm.slane %v2458_v48, 2 }
 0x3fb   :  { %v1254_v33 = vperm.slane %v2455_v42, 3  ;;  %v2805_v55 = vperm.slane %v1871_v14, 3  ;;  %v1242_v8 = vmul.f32 %v1238_v56, %v1233_v31  ;;  %v1241_v10 = vmul.f32 %v1237_v30, %v1233_v31 }
 0x3fc   :  { %v1208_v58 = vperm.slane %v2466_v1, 0  ;;  %v1220_v38 = vperm.slane %v2466_v1, 1  ;;  %v1223_v29 = vmul.f32 %v1219_v49, %v1217_v60  ;;  %v1236_v49 = vperm.slane %v2466_v1, 2 }
 0x3fd   :  { %v1253_v14 = vperm.slane %v2446_v28, 3  ;;  %v2807_v30 = vperm.slane %v2376_v63, 3 }
 0x3fe   :  { %v1205_v4 = vpop.permute.xlu1 %1204  ;;  %v1224_v17 = vmul.f32 %v1220_v38, %v1217_v60 }
 0x3ff   :  { %v1211_v23 = vmul.f32 %v1207_v24, %v1205_v4  ;;  %v1212_v57 = vmul.f32 %v1208_v58, %v1205_v4  ;;  %v1213_v46 = vmul.f32 %v1209_v20, %v1205_v4  ;;  %v418_v9 = vpop.permute.xlu0 %417  ;;  %v1214_v19 = vmul.f32 %v1210_v22, %v1205_v4 }
 0x400   :  { %v424_v62 = vmul.f32 %v2802_v15, %v418_v9  ;;  %v425_v45 = vmul.f32 %v2803_v50, %v418_v9  ;;  %v2804_v58 = vperm.slane %v1869_v13, 3  ;;  %v427_v60 = vmul.f32 %v2805_v55, %v418_v9 }
 0x401   :  { %v1227_v7 = vadd.f32 %v1223_v29, %v1211_v23  ;;  %v1229_v38 = vadd.f32 %v1225_v6, %v1213_v46  ;;  %v1230_v24 = vadd.f32 %v1226_v51, %v1214_v19  ;;  %v1228_v22 = vadd.f32 %v1224_v17, %v1212_v57 }
 0x402   :  { %v426_v20 = vmul.f32 %v2804_v58, %v418_v9  ;;  %v428_v4 = vadd.f32 %v424_v62, %v2393_v12  ;;  %v429_v29 = vadd.f32 %v425_v45, %v2395_v35  ;;  %v431_v23 = vadd.f32 %v427_v60, %v2402_v16  ;;  %v2806_v9 = vld [vmem:[#allocation16_spill] sm:$0xff] }
 0x403   :  { %v1239_v15 = vmul.f32 %v1235_v47, %v1233_v31  ;;  %v1240_v6 = vmul.f32 %v1236_v49, %v1233_v31  ;;  %v1251_v46 = vperm.slane %v2458_v48, 3  ;;  %v1252_v13 = vperm.slane %v2466_v1, 3 }
 0x404   :  { %v430_v50 = vadd.f32 %v426_v20, %v2397_v61  ;;  %v438_v56 = vadd.f32 %v2806_v9, %v428_v4  ;;  %v1245_v57 = vadd.f32 %v1241_v10, %v1229_v38  ;;  %v1246_v12 = vadd.f32 %v1242_v8, %v1230_v24 }
 0x405   :  { %v1243_v17 = vadd.f32 %v1239_v15, %v1227_v7  ;;  %v439_v35 = vadd.f32 %v2806_v9, %v429_v29  ;;  %v441_v61 = vadd.f32 %v2806_v9, %v431_v23  ;;  %v1244_v47 = vadd.f32 %v1240_v6, %v1228_v22 }
 0x406   :  { %v440_v45 = vadd.f32 %v2806_v9, %v430_v50  ;;  %v2808_v19 = vperm.slane %v2384_v32, 3  ;;  %v2809_v49 = vperm.slane %v2389_v21, 3  ;;  %v1268_v32 = vpop.permute.xlu2 %1267 }
 0x407   :  { %v843_v16 = vpop.permute.xlu0 %842  ;;  %v1249_v31 = vpop.permute.xlu1 %1248 }
 0x408   :  { %v849_v51 = vmul.f32 %v2807_v30, %v843_v16  ;;  %v850_v62 = vmul.f32 %v2808_v19, %v843_v16  ;;  %v851_v7 = vmul.f32 %v2809_v49, %v843_v16  ;;  %v852_v38 = vmul.f32 %v848_v0, %v843_v16  ;;  %v1579_v30 = vld [vmem:[%s2736_s6 + $0x4] sm:$0xf] }
 0x409   :  { %v1255_v24 = vmul.f32 %v1251_v46, %v1249_v31  ;;  %v1256_v58 = vmul.f32 %v1252_v13, %v1249_v31  ;;  %v1257_v20 = vmul.f32 %v1253_v14, %v1249_v31  ;;  %v1258_v55 = vmul.f32 %v1254_v33, %v1249_v31 }
 0x40a   :  { %v853_v60 = vadd.f32 %v849_v51, %v2471_v26  ;;  %v854_v8 = vadd.f32 %v850_v62, %v2473_v36  ;;  %v855_v22 = vadd.f32 %v851_v7, %v839_v11  ;;  %v856_v4 = vadd.f32 %v852_v38, %v840_v40  ;;  %v2552_v51 = vld [vmem:[%s2737_s7 + $0x10] sm:$0xff] }
 0x40b   :  { %v1259_v29 = vadd.f32 %v1255_v24, %v1243_v17  ;;  %v1260_v63 = vadd.f32 %v1256_v58, %v1244_v47  ;;  %v1261_v10 = vadd.f32 %v1257_v20, %v1245_v57  ;;  %v1262_v50 = vadd.f32 %v1258_v55, %v1246_v12 }
 0x40c   :  { %v2513_v23 = vadd.f32 %v853_v60, %v438_v56  ;;  %v2515_v21 = vadd.f32 %v854_v8, %v439_v35  ;;  %v2517_v0 = vadd.f32 %v855_v22, %v440_v45  ;;  %v2519_v15 = vadd.f32 %v856_v4, %v441_v61 }
 0x40d   :  { %v1270_v33 = vadd.f32 %v1268_v32, %v1259_v29  ;;  %v1271_v6 = vadd.f32 %v1268_v32, %v1260_v63  ;;  %v1273_v26 = vadd.f32 %v1268_v32, %v1262_v50  ;;  %v1272_v46 = vadd.f32 %v1268_v32, %v1261_v10 }
 0x40e   :  { %v2810_v19 = vmov 2   ;;  %v2561_v62 = vpop.permute.xlu2 %1055 }
 0x40f   :  { %v1275_v36 = vmul.f32 0.5, %v1271_v6  ;;  %v1277_v11 = vmul.f32 0.5, %v1273_v26  ;;  %v1274_v40 = vmul.f32 0.5, %v1270_v33  ;;  %v1276_v13 = vmul.f32 0.5, %v1272_v46 }
 0x410   :  { %v2563_v49 = vpop.permute.xlu1 %1043 }
 0x411   :  { %1679 = vtanh.f32 %v1275_v36 }
 0x412   :  { %1681 = vtanh.f32 %v1277_v11 }
 0x413   :  { %1683 = vtanh.f32 %v1274_v40 }
 0x414   :  { %1685 = vtanh.f32 %v1276_v13 }
 0x417   :  { %v1680_v14 = vpop.eup %1679 }
 0x418   :  { %v1283_v9 = vmul.f32 0.5, %v1680_v14  ;;  %v1682_v56 = vpop.eup %1681 }
 0x419   :  { %v1684_v17 = vpop.eup %1683  ;;  %v1285_v57 = vmul.f32 0.5, %v1682_v56 }
 0x41a   :  { %v2521_v12 = vadd.f32 0.5, %v1283_v9  ;;  %v1686_v35 = vpop.eup %1685  ;;  %v1282_v16 = vmul.f32 0.5, %v1684_v17  ;;  %v1033_v17 = vmul.f32 0.11111111, %v2458_v48 }
 0x41b   :  { %v2523_v45 = vadd.f32 0.5, %v1285_v57  ;;  %v1284_v61 = vmul.f32 0.5, %v1686_v35  ;;  %v1035_v57 = vmul.f32 0.11111111, %v2446_v28 }
 0x41c   :  { %1306 = vrot.lane.b32.xlu0 %v2521_v12, %s1737_s0  ;;  %1294 = vrot.lane.b32.xlu2 %v2521_v12, %s1738_s19  ;;  %v2533_v31 = vadd.f32 0.5, %v1282_v16  ;;  %v1037_v35 = vsub.f32 %v2244_v59, %v1033_v17  ;;  %v2811_v16 = vld [vmem:[#allocation19_spill] sm:$0xff] }
 0x41d   :  { %1298 = vrot.lane.b32.xlu1 %v2523_v45, %s1738_s19  ;;  %v2531_v47 = vadd.f32 0.5, %v1284_v61  ;;  %v1036_v61 = vmul.f32 0.11111111, %v2455_v42 }
 0x41e   :  { %v1074_v28 = vperm.slane %v1037_v35, 2 }
 0x424   :  { %1296 = vrot.lane.b32.xlu0 %v2531_v47, %s1738_s19  ;;  %1304 = vrot.lane.b32.xlu2 %v2533_v31, %s1737_s0 }
 0x425   :  { %1292 = vrot.lane.b32.xlu1 %v2533_v31, %s1738_s19 }
 0x42c   :  { %1087 = vperm.xlu0 %1630, %v2330_v41   ;;  %1310 = vrot.lane.b32.xlu2 %v2523_v45, %s1737_s0 }
 0x42d   :  { %1308 = vrot.lane.b32.xlu1 %v2531_v47, %s1737_s0 }
 0x434   :  { %1635 = vset.pattern.permute.xlu0 %v2810_v19  ;;  %1137 = vperm.xlu2 %1636, %v2552_v51  }
 0x435   :  { %1071 = vperm.xlu0 %1635, %v2330_v41   ;;  %1106 = vperm.xlu1 %1633, %v1579_v30  }
 0x43c   :  { %1639 = vset.pattern.permute.xlu2 %v2789_v25 }
 0x43d   :  { %1637 = vset.pattern.permute.xlu1 %v2789_v25 }
 0x43e   :  { %1149 = vperm.xlu1 %1637, %v2552_v51  }
 0x446   :  { %1638 = vset.pattern.permute.xlu1 %v2788_v2 }
 0x476   :  { %v1295_v7 = vpop.permute.xlu2 %1294 }
 0x47e   :  { %v1305_v58 = vpop.permute.xlu2 %1304 }
 0x486   :  { %v1311_v32 = vpop.permute.xlu2 %1310 }
 0x487   :  { %v1315_v46 = vsel %vm464_vm2, %v1311_v32, %v1305_v58 }
 0x488   :  { %v1327_v13 = vmul.f32 %v1969_v3, %v1315_v46  ;;  %v1585_v3 = vld [vmem:[%s2737_s7 + $0x18] sm:$0xff] }
 0x48e   :  { %v1307_v38 = vpop.permute.xlu0 %1306  ;;  %v2645_v42 = vpop.permute.xlu2 %1137 }
 0x48f   :  { %v1299_v24 = vpop.permute.xlu1 %1298  ;;  %v1314_v41 = vsel %vm464_vm2, %v1305_v58, %v1307_v38 }
 0x490   :  { %v1324_v63 = vmul.f32 %v1945_v52, %v1314_v41 }
 0x496   :  { %v1297_v20 = vpop.permute.xlu0 %1296 }
 0x497   :  { %v1293_v55 = vpop.permute.xlu1 %1292  ;;  %v1301_v8 = vsel %vm451_vm5, %v1295_v7, %v1297_v20  ;;  %v1300_v4 = vsel %vm451_vm5, %v1297_v20, %v1299_v24 }
 0x498   :  { %v1303_v60 = vsel %vm451_vm5, %v1299_v24, %v1293_v55  ;;  %v1302_v29 = vsel %vm451_vm5, %v1293_v55, %v1295_v7  ;;  %v1318_v50 = vmul.f32 %v1915_v34, %v1301_v8  ;;  %v1319_v33 = vmul.f32 %v1953_v39, %v1300_v4 }
 0x499   :  { %v1316_v22 = vmul.f32 %v1929_v43, %v1303_v60  ;;  %v1317_v6 = vmul.f32 %v1932_v44, %v1302_v29 }
 0x49a   :  { %v1322_v52 = vadd.f32 %v1318_v50, %v2531_v47  ;;  %v1323_v39 = vadd.f32 %v1319_v33, %v2523_v45 }
 0x49b   :  { %v1320_v10 = vadd.f32 %v1316_v22, %v2533_v31  ;;  %v1321_v44 = vadd.f32 %v1317_v6, %v2521_v12 }
 0x49c   :  { %v2605_v56 = vadd.f32 %v1327_v13, %v1323_v39 }
 0x49d   :  { %v2581_v26 = vadd.f32 %v1324_v63, %v1320_v10 }
 0x49f   :  { %1332 = vrot.lane.b32.xlu2 %v2581_v26, %s1740_s22  ;;  %v1309_v43 = vpop.permute.xlu1 %1308 }
 0x4a0   :  { %v1312_v36 = vsel %vm464_vm2, %v1309_v43, %v1311_v32  ;;  %v1313_v34 = vsel %vm464_vm2, %v1307_v38, %v1309_v43  ;;  %v1046_v38 = vperm.slane %v1037_v35, 0 }
 0x4a1   :  { %v1325_v11 = vmul.f32 %v1948_v53, %v1313_v34  ;;  %v1326_v40 = vmul.f32 %v1919_v54, %v1312_v36  ;;  %v1583_v54 = vld [vmem:[%s2735_s5 + $0x8] sm:$0xf]  ;;  %v1090_v36 = vperm.slane %v1037_v35, 3  ;;  %s1742_s5 = smov [#allocation2]  }
 0x4a2   :  { %v1584_v53 = vld [vmem:[%s2736_s6 + $0x8] sm:$0xf]  ;;  %s1552_s6 = sshll.u32 %s1742_s5, 4  ;;  %s1553_s6 = int_to_ptr.vmem [resolvable:$true] %s1552_s6 }
 0x4a3   :  { %v2597_v14 = vadd.f32 %v1325_v11, %v1321_v44  ;;  %v2599_v9 = vadd.f32 %v1326_v40, %v1322_v52 }
 0x4a5   :  { %1334 = vrot.lane.b32.xlu0 %v2597_v14, %s1740_s22  ;;  %1336 = vrot.lane.b32.xlu1 %v2599_v9, %s1740_s22 }
 0x4a7   :  { %1338 = vrot.lane.b32.xlu2 %v2605_v56, %s1740_s22  ;;  %v1107_v34 = vpop.permute.xlu1 %1106 }
 0x4ad   :  { %1344 = vrot.lane.b32.xlu0 %v2581_v26, %s1741_s23  ;;  %1346 = vrot.lane.b32.xlu1 %v2597_v14, %s1741_s23 }
 0x4af   :  { %1348 = vrot.lane.b32.xlu2 %v2599_v9, %s1741_s23 }
 0x4b5   :  { %1350 = vrot.lane.b32.xlu0 %v2605_v56, %s1741_s23  ;;  %1382 = vperm.xlu1 %1638, %v1583_v54  }
 0x4b7   :  { %1394 = vperm.xlu2 %1639, %v1583_v54  }
 0x4bd   :  { %1410 = vperm.xlu0 %1635, %v1583_v54   ;;  %1640 = vset.pattern.permute.xlu1 %v2790_v27 }
 0x4be   :  { %1426 = vperm.xlu1 %1640, %v1583_v54  }
 0x4bf   :  { %1641 = vset.pattern.permute.xlu2 %v2788_v2  ;;  %v1088_v2 = vpop.permute.xlu0 %1087 }
 0x4c0   :  { %1445 = vperm.xlu2 %1641, %v1584_v53   ;;  %v1094_v17 = vmul.f32 %v1090_v36, %v1088_v2 }
 0x4c5   :  { %1643 = vset.pattern.permute.xlu0 %v2789_v25  ;;  %v1034_v25 = vmul.f32 0.11111111, %v2466_v1  ;;  %v1050_v1 = vmul.f32 %v1046_v38, %v2563_v49 }
 0x4c6   :  { %1488 = vperm.xlu0 %1643, %v1585_v3   ;;  %1642 = vset.pattern.permute.xlu1 %v2810_v19 }
 0x4c7   :  { %1165 = vperm.xlu1 %1642, %v2552_v51   ;;  %v1038_v30 = vsub.f32 %v2811_v16, %v1034_v25  ;;  %v1072_v55 = vpop.permute.xlu0 %1071 }
 0x4c8   :  { %1476 = vperm.xlu2 %1641, %v1585_v3   ;;  %v1078_v63 = vmul.f32 %v1074_v28, %v1072_v55 }
 0x4c9   :  { %v1059_v58 = vperm.slane %v1038_v30, 1  ;;  %v1047_v20 = vperm.slane %v1038_v30, 0  ;;  %v1075_v8 = vperm.slane %v1038_v30, 2  ;;  %v1091_v54 = vperm.slane %v1038_v30, 3 }
 0x4cb   :  { %v1051_v60 = vmul.f32 %v1047_v20, %v2563_v49  ;;  %v1063_v50 = vmul.f32 %v1059_v58, %v2561_v62  ;;  %v1079_v32 = vmul.f32 %v1075_v8, %v1072_v55 }
 0x4cd   :  { %v1067_v52 = vadd.f32 %v1063_v50, %v1051_v60 }
 0x4ce   :  { %1646 = vset.pattern.permute.xlu0 %v2790_v27 }
 0x4cf   :  { %1644 = vset.pattern.permute.xlu1 %v2790_v27  ;;  %v2812_v27 = vld [vmem:[#allocation17_spill] sm:$0xff]  ;;  %v1083_v53 = vadd.f32 %v1079_v32, %v1067_v52 }
 0x4d0   :  { %1645 = vset.pattern.permute.xlu2 %v2810_v19  ;;  %1181 = vperm.xlu1 %1644, %v2552_v51   ;;  %v1039_v7 = vsub.f32 %v2812_v27, %v1035_v57  ;;  %v1058_v19 = vperm.slane %v1037_v35, 1  ;;  %v2813_v51 = vld [vmem:[#allocation18_spill] sm:$0xff] }
 0x4d1   :  { %1504 = vperm.xlu2 %1645, %v1585_v3   ;;  %v1040_v24 = vsub.f32 %v2813_v51, %v1036_v61  ;;  %v1095_v61 = vmul.f32 %v1091_v54, %v1088_v2 }
 0x4d2   :  { %v1060_v48 = vperm.slane %v1039_v7, 1  ;;  %v1048_v41 = vperm.slane %v1039_v7, 0  ;;  %v1062_v22 = vmul.f32 %v1058_v19, %v2561_v62  ;;  %v1076_v29 = vperm.slane %v1039_v7, 2 }
 0x4d3   :  { %v1061_v10 = vperm.slane %v1040_v24, 1  ;;  %v1049_v6 = vperm.slane %v1040_v24, 0  ;;  %v1077_v11 = vperm.slane %v1040_v24, 2  ;;  %v1099_v35 = vadd.f32 %v1095_v61, %v1083_v53 }
 0x4d4   :  { %v1052_v4 = vmul.f32 %v1048_v41, %v2563_v49  ;;  %v1064_v33 = vmul.f32 %v1060_v48, %v2561_v62  ;;  %v1066_v43 = vadd.f32 %v1062_v22, %v1050_v1  ;;  %v1080_v46 = vmul.f32 %v1076_v29, %v1072_v55  ;;  %v2653_v1 = vpop.permute.xlu1 %1149 }
 0x4d5   :  { %v1053_v39 = vmul.f32 %v1049_v6, %v2563_v49  ;;  %v1065_v13 = vmul.f32 %v1061_v10, %v2561_v62  ;;  %v1081_v25 = vmul.f32 %v1077_v11, %v1072_v55  ;;  %v1093_v48 = vperm.slane %v1040_v24, 3 }
 0x4d6   :  { %v1068_v44 = vadd.f32 %v1064_v33, %v1052_v4  ;;  %v1082_v40 = vadd.f32 %v1078_v63, %v1066_v43  ;;  %v1110_v62 = vadd.f32 %v1107_v34, %v1099_v35 }
 0x4d7   :  { %v1069_v38 = vadd.f32 %v1065_v13, %v1053_v39  ;;  %v1097_v28 = vmul.f32 %v1093_v48, %v1088_v2 }
 0x4d8   :  { %1520 = vperm.xlu1 %1644, %v1585_v3   ;;  %v1092_v3 = vperm.slane %v1039_v7, 3  ;;  %v1084_v57 = vadd.f32 %v1080_v46, %v1068_v44  ;;  %v1098_v20 = vadd.f32 %v1094_v17, %v1082_v40  ;;  %v1114_v22 = vmul.f32 0.5, %v1110_v62  ;;  %v2814_v17 = vld [vmem:[#allocation8_spill] sm:$0xff] }
 0x4d9   :  { %v1085_v41 = vadd.f32 %v1081_v25, %v1069_v38 }
 0x4da   :  { %v1096_v58 = vmul.f32 %v1092_v3, %v1088_v2  ;;  %v1109_v60 = vadd.f32 %v1107_v34, %v1098_v20 }
 0x4db   :  { %v1101_v30 = vadd.f32 %v1097_v28, %v1085_v41 }
 0x4dc   :  { %v1100_v49 = vadd.f32 %v1096_v58, %v1084_v57  ;;  %v1113_v7 = vmul.f32 0.5, %v1109_v60 }
 0x4dd   :  { %v1112_v4 = vadd.f32 %v1107_v34, %v1101_v30 }
 0x4de   :  { %v1111_v8 = vadd.f32 %v1107_v34, %v1100_v49  ;;  %1687 = vtanh.f32 %v1113_v7 }
 0x4df   :  { %1689 = vtanh.f32 %v1114_v22  ;;  %v1116_v50 = vmul.f32 0.5, %v1112_v4  ;;  %v2815_v22 = vld [vmem:[#allocation10_spill] sm:$0xff] }
 0x4e0   :  { %v1115_v29 = vmul.f32 0.5, %v1111_v8 }
 0x4e2   :  { %1691 = vtanh.f32 %v1115_v29 }
 0x4e3   :  { %1693 = vtanh.f32 %v1116_v50 }
 0x4e4   :  { %v1688_v32 = vpop.eup %1687 }
 0x4e5   :  { %v1690_v33 = vpop.eup %1689  ;;  %v1121_v11 = vmul.f32 0.5, %v1688_v32 }
 0x4e6   :  { %v1122_v53 = vmul.f32 0.5, %v1690_v33 }
 0x4e8   :  { %v1692_v52 = vpop.eup %1691  ;;  %v1126_v48 = vadd.f32 0.5, %v1122_v53 }
 0x4e9   :  { %v1123_v3 = vmul.f32 0.5, %v1692_v52  ;;  %v1694_v57 = vpop.eup %1693 }
 0x4ea   :  { %v1124_v35 = vmul.f32 0.5, %v1694_v57  ;;  %v2685_v18 = vadd.f32 %v1126_v48, %v2811_v16 }
 0x4ec   :  { %v1128_v33 = vadd.f32 0.5, %v1124_v35 }
 0x4f9   :  { %v1333_v19 = vpop.permute.xlu2 %1332 }
 0x501   :  { %v1339_v55 = vpop.permute.xlu2 %1338 }
 0x502   :  { %v1343_v24 = vsel %vm493_vm12, %v1339_v55, %v1333_v19 }
 0x503   :  { %v1356_v2 = vmul.f32 %v2799_v5, %v1343_v24 }
 0x505   :  { %v1360_v34 = vadd.f32 %v1356_v2, %v2581_v26 }
 0x509   :  { %v1349_v6 = vpop.permute.xlu2 %1348 }
 0x511   :  { %v1395_v49 = vpop.permute.xlu2 %1394 }
 0x517   :  { %v1335_v63 = vpop.permute.xlu0 %1334  ;;  %v1337_v10 = vpop.permute.xlu1 %1336 }
 0x518   :  { %v1342_v43 = vsel %vm493_vm12, %v1333_v19, %v1335_v63  ;;  %v1341_v36 = vsel %vm493_vm12, %v1335_v63, %v1337_v10  ;;  %v1125_v19 = vadd.f32 0.5, %v1121_v11  ;;  %v1340_v38 = vsel %vm493_vm12, %v1337_v10, %v1339_v55 }
 0x519   :  { %v1361_v40 = vadd.f32 %v1342_v43, %v2597_v14  ;;  %v1358_v25 = vmul.f32 %v2814_v17, %v1341_v36  ;;  %v1127_v14 = vadd.f32 0.5, %v1123_v3  ;;  %v1363_v7 = vadd.f32 %v1340_v38, %v2605_v56 }
 0x51a   :  { %v2682_v24 = vadd.f32 %v1125_v19, %v2244_v59 }
 0x51b   :  { %v2688_v56 = vadd.f32 %v1127_v14, %v2812_v27 }
 0x51f   :  { %v1345_v46 = vpop.permute.xlu0 %1344  ;;  %v1347_v39 = vpop.permute.xlu1 %1346 }
 0x520   :  { %v1353_v44 = vsel %vm506_vm13, %v1347_v39, %v1349_v6  ;;  %v1354_v5 = vsel %vm506_vm13, %v1345_v46, %v1347_v39 }
 0x521   :  { %v1365_v13 = vmul.f32 %v2801_v37, %v1353_v44  ;;  %v1368_v54 = vadd.f32 %v1360_v34, %v1354_v5  ;;  %v1362_v37 = vadd.f32 %v1358_v25, %v2599_v9 }
 0x523   :  { %v1369_v61 = vadd.f32 %v1365_v13, %v1361_v40  ;;  %v1372_v26 = vmul.f32 0.11111111, %v1368_v54 }
 0x525   :  { %v1373_v58 = vmul.f32 0.11111111, %v1369_v61  ;;  %v1376_v20 = vsub.f32 %v2533_v31, %v1372_v26 }
 0x527   :  { %v1351_v41 = vpop.permute.xlu0 %1350  ;;  %v1377_v28 = vsub.f32 %v2521_v12, %v1373_v58  ;;  %v1397_v30 = vperm.slane %v1376_v20, 1  ;;  %v1383_v8 = vpop.permute.xlu1 %1382  ;;  %v1385_v29 = vperm.slane %v1376_v20, 0  ;;  %v1413_v36 = vperm.slane %v1376_v20, 2 }
 0x528   :  { %v1352_v60 = vsel %vm506_vm13, %v1349_v6, %v1351_v41  ;;  %v1355_v62 = vsel %vm506_vm13, %v1351_v41, %v1345_v46  ;;  %v1429_v59 = vperm.slane %v1376_v20, 3 }
 0x529   :  { %v1367_v55 = vmul.f32 %v2815_v22, %v1355_v62  ;;  %v1370_v4 = vadd.f32 %v1362_v37, %v1352_v60  ;;  %v1398_v63 = vperm.slane %v1377_v28, 1  ;;  %v1401_v10 = vmul.f32 %v1397_v30, %v1395_v49 }
 0x52a   :  { %v1386_v9 = vperm.slane %v1377_v28, 0  ;;  %v1389_v32 = vmul.f32 %v1385_v29, %v1383_v8  ;;  %v1414_v39 = vperm.slane %v1377_v28, 2  ;;  %v1430_v44 = vperm.slane %v1377_v28, 3 }
 0x52b   :  { %v1371_v50 = vadd.f32 %v1367_v55, %v1363_v7  ;;  %v1374_v2 = vmul.f32 0.11111111, %v1370_v4  ;;  %v1402_v6 = vmul.f32 %v1398_v63, %v1395_v49  ;;  %v1140_v37 = vperm.slane %v2682_v24, 0 }
 0x52c   :  { %v1390_v43 = vmul.f32 %v1386_v9, %v1383_v8  ;;  %v1405_v34 = vadd.f32 %v1401_v10, %v1389_v32  ;;  %v1152_v28 = vperm.slane %v2682_v24, 1  ;;  %v2695_v4 = vadd.f32 %v1128_v33, %v2813_v51 }
 0x52d   :  { %v1375_v46 = vmul.f32 0.11111111, %v1371_v50  ;;  %v1378_v52 = vsub.f32 %v2531_v47, %v1374_v2  ;;  %v1446_v50 = vpop.permute.xlu2 %1445  ;;  %v1142_v32 = vperm.slane %v2688_v56, 0 }
 0x52e   :  { %v1406_v54 = vadd.f32 %v1402_v6, %v1390_v43  ;;  %v1153_v6 = vperm.slane %v2685_v18, 1 }
 0x52f   :  { %v1379_v5 = vsub.f32 %v2523_v45, %v1375_v46  ;;  %v1399_v11 = vperm.slane %v1378_v52, 1  ;;  %v1387_v40 = vperm.slane %v1378_v52, 0  ;;  %v1411_v13 = vpop.permute.xlu0 %1410  ;;  %v1415_v16 = vperm.slane %v1378_v52, 2 }
 0x530   :  { %v1417_v53 = vmul.f32 %v1413_v36, %v1411_v13  ;;  %v1418_v3 = vmul.f32 %v1414_v39, %v1411_v13  ;;  %v1431_v17 = vperm.slane %v1378_v52, 3  ;;  %v1427_v26 = vpop.permute.xlu1 %1426  ;;  %v1154_v52 = vperm.slane %v2688_v56, 1 }
 0x531   :  { %v1400_v27 = vperm.slane %v1379_v5, 1  ;;  %v1403_v25 = vmul.f32 %v1399_v11, %v1395_v49  ;;  %v1388_v57 = vperm.slane %v1379_v5, 0  ;;  %v1391_v61 = vmul.f32 %v1387_v40, %v1383_v8 }
 0x532   :  { %v1416_v19 = vperm.slane %v1379_v5, 2  ;;  %v1419_v38 = vmul.f32 %v1415_v16, %v1411_v13  ;;  %v1421_v58 = vadd.f32 %v1417_v53, %v1405_v34  ;;  %v1422_v20 = vadd.f32 %v1418_v3, %v1406_v54 }
 0x533   :  { %v1404_v35 = vmul.f32 %v1400_v27, %v1395_v49  ;;  %v1392_v48 = vmul.f32 %v1388_v57, %v1383_v8  ;;  %v1407_v14 = vadd.f32 %v1403_v25, %v1391_v61  ;;  %v1432_v41 = vperm.slane %v1379_v5, 3 }
 0x534   :  { %v1433_v60 = vmul.f32 %v1429_v59, %v1427_v26  ;;  %v1434_v62 = vmul.f32 %v1430_v44, %v1427_v26  ;;  %v1420_v7 = vmul.f32 %v1416_v19, %v1411_v13  ;;  %v1435_v55 = vmul.f32 %v1431_v17, %v1427_v26 }
 0x535   :  { %v1408_v30 = vadd.f32 %v1404_v35, %v1392_v48  ;;  %v1423_v22 = vadd.f32 %v1419_v38, %v1407_v14  ;;  %v1168_v49 = vperm.slane %v2682_v24, 2  ;;  %v1141_v8 = vperm.slane %v2685_v18, 0 }
 0x536   :  { %v1437_v29 = vadd.f32 %v1433_v60, %v1421_v58  ;;  %v1438_v63 = vadd.f32 %v1434_v62, %v1422_v20  ;;  %v1436_v9 = vmul.f32 %v1432_v41, %v1427_v26  ;;  %v1169_v36 = vperm.slane %v2685_v18, 2 }
 0x537   :  { %v1424_v10 = vadd.f32 %v1420_v7, %v1408_v30  ;;  %v1439_v2 = vadd.f32 %v1435_v55, %v1423_v22  ;;  %v1143_v34 = vperm.slane %v2695_v4, 0  ;;  %v1155_v39 = vperm.slane %v2695_v4, 1 }
 0x538   :  { %v1448_v43 = vadd.f32 %v1446_v50, %v1437_v29  ;;  %v1449_v46 = vadd.f32 %v1446_v50, %v1438_v63  ;;  %v1144_v11 = vmul.f32 %v1140_v37, %v2645_v42  ;;  %v1156_v40 = vmul.f32 %v1152_v28, %v2653_v1 }
 0x539   :  { %v1440_v51 = vadd.f32 %v1436_v9, %v1424_v10  ;;  %v1450_v33 = vadd.f32 %v1446_v50, %v1439_v2  ;;  %v1166_v5 = vpop.permute.xlu1 %1165  ;;  %v1145_v54 = vmul.f32 %v1141_v8, %v2645_v42  ;;  %v1146_v53 = vmul.f32 %v1142_v32, %v2645_v42  ;;  %v1477_v8 = vpop.permute.xlu2 %1476 }
 0x53a   :  { %v1452_v59 = vmul.f32 0.5, %v1448_v43  ;;  %v1453_v44 = vmul.f32 0.5, %v1449_v46  ;;  %v1157_v3 = vmul.f32 %v1153_v6, %v2653_v1  ;;  %v1158_v17 = vmul.f32 %v1154_v52, %v2653_v1 }
 0x53b   :  { %v1451_v13 = vadd.f32 %v1446_v50, %v1440_v51  ;;  %v1454_v16 = vmul.f32 0.5, %v1450_v33  ;;  %v1170_v25 = vperm.slane %v2688_v56, 2  ;;  %v1147_v57 = vmul.f32 %v1143_v34, %v2645_v42 }
 0x53c   :  { %1695 = vtanh.f32 %v1452_v59  ;;  %v1159_v61 = vmul.f32 %v1155_v39, %v2653_v1  ;;  %v1171_v26 = vperm.slane %v2695_v4, 2  ;;  %v1172_v19 = vmul.f32 %v1168_v49, %v1166_v5  ;;  %v1489_v59 = vpop.permute.xlu0 %1488 }
 0x53d   :  { %v1455_v27 = vmul.f32 0.5, %v1451_v13  ;;  %1697 = vtanh.f32 %v1453_v44  ;;  %v1173_v38 = vmul.f32 %v1169_v36, %v1166_v5  ;;  %v1174_v58 = vmul.f32 %v1170_v25, %v1166_v5 }
 0x53e   :  { %1699 = vtanh.f32 %v1454_v16  ;;  %v1160_v20 = vadd.f32 %v1156_v40, %v1144_v11  ;;  %v1161_v35 = vadd.f32 %v1157_v3, %v1145_v54  ;;  %v1162_v48 = vadd.f32 %v1158_v17, %v1146_v53 }
 0x53f   :  { %1701 = vtanh.f32 %v1455_v27  ;;  %v1175_v14 = vmul.f32 %v1171_v26, %v1166_v5  ;;  %v1184_v41 = vperm.slane %v2682_v24, 3  ;;  %v1163_v28 = vadd.f32 %v1159_v61, %v1147_v57 }
 0x540   :  { %v1185_v60 = vperm.slane %v2685_v18, 3  ;;  %v1186_v42 = vperm.slane %v2688_v56, 3  ;;  %v1187_v1 = vperm.slane %v2695_v4, 3  ;;  %v1176_v7 = vadd.f32 %v1172_v19, %v1160_v20 }
 0x541   :  { %v1177_v22 = vadd.f32 %v1173_v38, %v1161_v35  ;;  %v1178_v55 = vadd.f32 %v1174_v58, %v1162_v48  ;;  %v1179_v18 = vadd.f32 %v1175_v14, %v1163_v28  ;;  %v1505_v19 = vpop.permute.xlu2 %1504 }
 0x542   :  { %v1696_v37 = vpop.eup %1695  ;;  %v1182_v29 = vpop.permute.xlu1 %1181 }
 0x543   :  { %v1698_v62 = vpop.eup %1697  ;;  %v1460_v30 = vmul.f32 0.5, %v1696_v37  ;;  %v1188_v10 = vmul.f32 %v1184_v41, %v1182_v29  ;;  %v1189_v9 = vmul.f32 %v1185_v60, %v1182_v29  ;;  %v1190_v24 = vmul.f32 %v1186_v42, %v1182_v29 }
 0x544   :  { %v1700_v63 = vpop.eup %1699  ;;  %v1461_v49 = vmul.f32 0.5, %v1698_v62  ;;  %v1191_v6 = vmul.f32 %v1187_v1, %v1182_v29 }
 0x545   :  { %v1702_v50 = vpop.eup %1701  ;;  %v1462_v2 = vmul.f32 0.5, %v1700_v63  ;;  %v1464_v32 = vadd.f32 0.5, %v1460_v30  ;;  %v1192_v4 = vadd.f32 %v1188_v10, %v1176_v7  ;;  %v1193_v46 = vadd.f32 %v1189_v9, %v1177_v22 }
 0x546   :  { %v1463_v56 = vmul.f32 0.5, %v1702_v50  ;;  %v1465_v43 = vadd.f32 0.5, %v1461_v49  ;;  %v1194_v33 = vadd.f32 %v1190_v24, %v1178_v55  ;;  %v1195_v36 = vadd.f32 %v1191_v6, %v1179_v18 }
 0x547   :  { %v1466_v52 = vadd.f32 0.5, %v1462_v2  ;;  %v1470_v51 = vadd.f32 %v1464_v32, %v2533_v31  ;;  %v1197_v44 = vadd.f32 %v1193_v46, %v2515_v21  ;;  %v1196_v5 = vadd.f32 %v1192_v4, %v2513_v23 }
 0x548   :  { %v1467_v34 = vadd.f32 0.5, %v1463_v56  ;;  %v1471_v39 = vadd.f32 %v1465_v43, %v2521_v12  ;;  %v1198_v1 = vadd.f32 %v1194_v33, %v2517_v0  ;;  %v1199_v62 = vadd.f32 %v1195_v36, %v2519_v15 }
 0x549   :  { %v1472_v11 = vadd.f32 %v1466_v52, %v2531_v47  ;;  %v1479_v40 = vperm.slane %v1470_v51, 0  ;;  %v1491_v13 = vperm.slane %v1470_v51, 1  ;;  %v1507_v16 = vperm.slane %v1470_v51, 2 }
 0x54a   :  { %v1473_v54 = vadd.f32 %v1467_v34, %v2523_v45  ;;  %v1480_v53 = vperm.slane %v1471_v39, 0  ;;  %v1492_v3 = vperm.slane %v1471_v39, 1  ;;  %v1508_v31 = vperm.slane %v1471_v39, 2  ;;  %v1521_v30 = vpop.permute.xlu1 %1520 }
 0x54b   :  { %v1481_v17 = vperm.slane %v1472_v11, 0  ;;  %v1483_v27 = vmul.f32 %v1479_v40, %v1477_v8  ;;  %v1493_v25 = vperm.slane %v1472_v11, 1  ;;  %v1495_v57 = vmul.f32 %v1491_v13, %v1489_v59 }
 0x54c   :  { %v1482_v12 = vperm.slane %v1473_v54, 0  ;;  %v1484_v61 = vmul.f32 %v1480_v53, %v1477_v8  ;;  %v1494_v26 = vperm.slane %v1473_v54, 1  ;;  %v1496_v21 = vmul.f32 %v1492_v3, %v1489_v59 }
 0x54d   :  { %v1485_v23 = vmul.f32 %v1481_v17, %v1477_v8  ;;  %v1497_v38 = vmul.f32 %v1493_v25, %v1489_v59  ;;  %v1499_v47 = vadd.f32 %v1495_v57, %v1483_v27  ;;  %v1509_v58 = vperm.slane %v1472_v11, 2 }
 0x54e   :  { %v1486_v20 = vmul.f32 %v1482_v12, %v1477_v8  ;;  %v1498_v35 = vmul.f32 %v1494_v26, %v1489_v59  ;;  %v1500_v48 = vadd.f32 %v1496_v21, %v1484_v61  ;;  %v1510_v45 = vperm.slane %v1473_v54, 2 }
 0x54f   :  { %v1501_v14 = vadd.f32 %v1497_v38, %v1485_v23  ;;  %v1511_v41 = vmul.f32 %v1507_v16, %v1505_v19  ;;  %v1512_v37 = vmul.f32 %v1508_v31, %v1505_v19  ;;  %v1513_v28 = vmul.f32 %v1509_v58, %v1505_v19 }
 0x550   :  { %v1502_v60 = vadd.f32 %v1498_v35, %v1486_v20  ;;  %v1514_v42 = vmul.f32 %v1510_v45, %v1505_v19  ;;  %v1523_v29 = vperm.slane %v1470_v51, 3  ;;  %v1524_v49 = vperm.slane %v1471_v39, 3 }
 0x551   :  { %v1515_v7 = vadd.f32 %v1511_v41, %v1499_v47  ;;  %v1516_v22 = vadd.f32 %v1512_v37, %v1500_v48  ;;  %v1517_v55 = vadd.f32 %v1513_v28, %v1501_v14  ;;  %v1525_v8 = vperm.slane %v1472_v11, 3 }
 0x552   :  { %v1518_v63 = vadd.f32 %v1514_v42, %v1502_v60  ;;  %v1526_v10 = vperm.slane %v1473_v54, 3  ;;  %v1527_v9 = vmul.f32 %v1523_v29, %v1521_v30  ;;  %v1528_v24 = vmul.f32 %v1524_v49, %v1521_v30 }
 0x553   :  { %v1529_v50 = vmul.f32 %v1525_v8, %v1521_v30 }
 0x554   :  { %v1530_v2 = vmul.f32 %v1526_v10, %v1521_v30  ;;  %v1531_v32 = vadd.f32 %v1527_v9, %v1515_v7  ;;  %v1532_v18 = vadd.f32 %v1528_v24, %v1516_v22 }
 0x555   :  { %v1533_v6 = vadd.f32 %v1529_v50, %v1517_v55 }
 0x556   :  { %v1534_v56 = vadd.f32 %v1530_v2, %v1518_v63  ;;  %v1535_v0 = vadd.f32 %v1531_v32, %v1196_v5  ;;  %v1536_v43 = vadd.f32 %v1532_v18, %v1197_v44 }
 0x557   :  { %v1537_v15 = vadd.f32 %v1533_v6, %v1198_v1 }
 0x558   :  { %v1538_v4 = vadd.f32 %v1534_v56, %v1199_v62  ;;  %v1539_v46 = vmax.f32 %v1535_v0, 0.0  ;;  %v1540_v52 = vmax.f32 %v1536_v43, 0.0 }
 0x559   :  { %v1541_v51 = vmax.f32 %v1537_v15, 0.0 }
 0x55a   :  { %v1542_v33 = vmax.f32 %v1538_v4, 0.0  ;;  %1543 = vst [vmem:[#allocation2] sm:$0xff] %v1539_v46 }
 0x55b   :  { %1544 = vst [vmem:[#allocation2 + $0x8] sm:$0xff] %v1540_v52 }
 0x55c   :  { %1545 = vst [vmem:[#allocation2 + $0x10] sm:$0xff] %v1541_v51 }
 0x55d   :  { %1546 = vst [vmem:[#allocation2 + $0x18] sm:$0xff] %v1542_v33 }
 0x55e   :  { %1557 = dma.vmem_to_hbm [thread:$0]  %s1553_s6, 512, %s1555_s30, [#allocation3]  }
 0x55f   :  { %1727 = dma.done.wait [#allocation3], 512  }
 0x560   :  { %1728 = vsyncadd [#allocation3], 4294966784 }
 0x561   :  { %1562 = vsyncpa [#allocation3], 1 }

</bundles_post_ra>
